<compile_context>
chip_gen: v5e
topology: v5e:2x2
jax: 0.10.0
libtpu: 0.0.40
codegen_flags: <defaults>
</compile_context>

<pallas_src>
import math
import functools

import jax
import jax.numpy as jnp
from jax.experimental import pallas as pl
from jax.experimental.pallas import tpu as pltpu

# ----------------------------- config -----------------------------------------
D_MODEL = 64
N_HEADS = 8
D_K = 64
D_V = 64
D_FF = 256
N_LAYERS = 1   # TODO(synk): if N_LAYERS > 1, stack layer weights as [L, ...] and loop inside the kernel.
LN_EPS = 1e-5


# ----------------------------- fused Pallas kernel -----------------------------
def _make_fused_kernel(B, S):
    """Builds the fused kernel: grid step 0 = encoder A, step 1 = encoder B + head."""
    BS = B * S

    def kernel(x_ref, bias_ref,
               wq_ref, wk_ref, wv_ref, wo_ref,
               w1_ref, b1_ref, w2_ref, b2_ref,
               g1_ref, be1_ref, g2_ref, be2_ref,
               fcw_ref, fcb_ref,
               out_ref, enc_acc):
        e = pl.program_id(0)

        x = x_ref[0]                               # [BS, D] f32 (embedding + PE)
        xb = x.astype(jnp.bfloat16)

        # --- QKV projections: one MXU dot per stage over the flattened batch ---
        scale = 1.0 / math.sqrt(D_K)
        q = jnp.dot(xb, wq_ref[0], preferred_element_type=jnp.float32) * scale
        k = jnp.dot(xb, wk_ref[0], preferred_element_type=jnp.float32)
        v = jnp.dot(xb, wv_ref[0], preferred_element_type=jnp.float32)

        q3 = q.astype(jnp.bfloat16).reshape(B, S, N_HEADS * D_K)
        k3 = k.astype(jnp.bfloat16).reshape(B, S, N_HEADS * D_K)
        v3 = v.astype(jnp.bfloat16).reshape(B, S, N_HEADS * D_V)

        wo = wo_ref[0]                             # [H*Dv, D] bf16

        # Additive pad-mask bias, broadcast ONCE (hoisted out of the head loop).
        bias_bqk = jnp.broadcast_to(bias_ref[0][:, None, :], (B, S, S))   # [B, Sq, Sk]

        # --- attention: static unroll over heads, batch handled by batched einsum ---
        attn_out = jnp.zeros((BS, D_MODEL), jnp.float32)
        for h in range(N_HEADS):
            qh = q3[:, :, h * D_K:(h + 1) * D_K]            # [B, S, Dk]
            kh = k3[:, :, h * D_K:(h + 1) * D_K]
            vh = v3[:, :, h * D_V:(h + 1) * D_V]
            s = jnp.einsum('bqd,bkd->bqk', qh, kh,
                           preferred_element_type=jnp.float32) + bias_bqk
            m = jnp.max(s, axis=-1, keepdims=True)
            p = jnp.exp(s - m)
            attn = p * pl.reciprocal(jnp.sum(p, axis=-1, keepdims=True), approx=True)
            ctx = jnp.einsum('bqk,bkd->bqd', attn.astype(jnp.bfloat16), vh,
                             preferred_element_type=jnp.float32)          # [B, S, Dv]
            # Fold the output projection per head via a row-slice of W_O
            # (avoids the 8-way 64-lane concatenate).
            attn_out = attn_out + jnp.dot(
                ctx.reshape(BS, D_V).astype(jnp.bfloat16),
                wo[h * D_V:(h + 1) * D_V, :],
                preferred_element_type=jnp.float32)

        # --- residual + LayerNorm 1 (f32) ---
        h1 = x + attn_out
        mu1 = jnp.mean(h1, axis=-1, keepdims=True)
        var1 = jnp.mean((h1 - mu1) ** 2, axis=-1, keepdims=True)
        h1n = (h1 - mu1) * jax.lax.rsqrt(var1 + LN_EPS) * g1_ref[0] + be1_ref[0]

        # --- position-wise FFN ---
        f = jnp.dot(h1n.astype(jnp.bfloat16), w1_ref[0],
                    preferred_element_type=jnp.float32) + b1_ref[0]
        f = jnp.maximum(f, 0.0)
        f = jnp.dot(f.astype(jnp.bfloat16), w2_ref[0],
                    preferred_element_type=jnp.float32) + b2_ref[0]

        # --- residual + LayerNorm 2 (f32) ---
        h2 = h1n + f
        mu2 = jnp.mean(h2, axis=-1, keepdims=True)
        var2 = jnp.mean((h2 - mu2) ** 2, axis=-1, keepdims=True)
        enc = (h2 - mu2) * jax.lax.rsqrt(var2 + LN_EPS) * g2_ref[0] + be2_ref[0]

        @pl.when(e == 0)
        def _():
            enc_acc[...] = enc          # keep encoder-A output VMEM-resident

        @pl.when(e == pl.num_programs(0) - 1)
        def _():
            # combined = enc_a * enc_b ; pooled = mean over seq ; sigmoid(pooled @ W + b)
            prod = enc_acc[...] * enc                                     # [BS, D]
            pooled = jnp.mean(prod.reshape(B, S, D_MODEL), axis=1)        # [B, D]
            # head as a lane reduction (avoids an N=1 MXU matmul)
            logits = jnp.sum(pooled * fcw_ref[...], axis=-1, keepdims=True) + fcb_ref[...]
            out_ref[...] = 1.0 / (1.0 + jnp.exp(-logits))

    return kernel


# ----------------------------- parameter init ----------------------------------
def _sinusoidal_pe(max_len, d_model):
    position = jnp.arange(max_len, dtype=jnp.float32)[:, None]
    div_term = jnp.exp(jnp.arange(0, d_model, 2, dtype=jnp.float32)
                       * (-math.log(10000.0) / d_model))
    pe = jnp.zeros((max_len, d_model), jnp.float32)
    pe = pe.at[:, 0::2].set(jnp.sin(position * div_term))
    pe = pe.at[:, 1::2].set(jnp.cos(position * div_term))
    return pe


def init_encoder_params(key, vocab_size, max_len):
    keys = jax.random.split(key, 2 + 6 * N_LAYERS)
    params = {
        "emb": jax.random.normal(keys[0], (vocab_size, D_MODEL), jnp.float32) * 0.1,
        "pe": _sinusoidal_pe(max_len, D_MODEL),
        "layers": [],
    }
    kidx = 2
    for _ in range(N_LAYERS):
        def nrm(k, shape, fan_in):
            return jax.random.normal(k, shape, jnp.float32) / math.sqrt(fan_in)
        layer = {
            "wq": nrm(keys[kidx + 0], (D_MODEL, N_HEADS * D_K), D_MODEL),
            "wk": nrm(keys[kidx + 1], (D_MODEL, N_HEADS * D_K), D_MODEL),
            "wv": nrm(keys[kidx + 2], (D_MODEL, N_HEADS * D_V), D_MODEL),
            "wo": nrm(keys[kidx + 3], (N_HEADS * D_V, D_MODEL), N_HEADS * D_V),
            "w1": nrm(keys[kidx + 4], (D_MODEL, D_FF), D_MODEL),
            "b1": jnp.zeros((1, D_FF), jnp.float32),
            "w2": nrm(keys[kidx + 5], (D_FF, D_MODEL), D_FF),
            "b2": jnp.zeros((1, D_MODEL), jnp.float32),
            "g1": jnp.ones((1, D_MODEL), jnp.float32),
            "be1": jnp.zeros((1, D_MODEL), jnp.float32),
            "g2": jnp.ones((1, D_MODEL), jnp.float32),
            "be2": jnp.zeros((1, D_MODEL), jnp.float32),
        }
        params["layers"].append(layer)
        kidx += 6
    return params


def init_transformer_params(key, vocab_size, max_len):
    ka, kb, kf = jax.random.split(key, 3)
    return {
        "enc_a": init_encoder_params(ka, vocab_size, max_len),
        "enc_b": init_encoder_params(kb, vocab_size, max_len),
        "fc_w": jax.random.normal(kf, (1, D_MODEL), jnp.float32) / math.sqrt(D_MODEL),
        "fc_b": jnp.zeros((1, 1), jnp.float32),
    }


# ----------------------------- forward (single fused pallas_call) ---------------
@jax.jit
def transformer_forward(params, input_a, input_b):
    B, S = input_a.shape

    # TODO(synk): embedding-table gather + sinusoidal PE add stay in XLA (no clean
    # tiny-Pallas equivalent for the vocab gather); dropout layers are identity (eval).
    def embed(enc_p, toks):
        x = jnp.take(enc_p["emb"], toks, axis=0) + enc_p["pe"][:S][None, :, :]
        return x.reshape(B * S, D_MODEL)

    x = jnp.stack([embed(params["enc_a"], input_a),
                   embed(params["enc_b"], input_b)], axis=0)              # [2, B*S, D]
    pad_bias = jnp.stack([(input_a == 0), (input_b == 0)], axis=0)
    pad_bias = pad_bias.astype(jnp.float32) * (-1.0e9)                    # [2, B, S]

    def stacked(name, dtype=None):
        w = jnp.stack([params["enc_a"]["layers"][0][name],
                       params["enc_b"]["layers"][0][name]], axis=0)
        return w.astype(dtype) if dtype is not None else w

    # bf16 matmul operands (f32 accumulation in-kernel); LN/bias params stay f32.
    wq = stacked("wq", jnp.bfloat16)
    wk = stacked("wk", jnp.bfloat16)
    wv = stacked("wv", jnp.bfloat16)
    wo = stacked("wo", jnp.bfloat16)
    w1 = stacked("w1", jnp.bfloat16)
    w2 = stacked("w2", jnp.bfloat16)
    b1 = stacked("b1")
    b2 = stacked("b2")
    g1 = stacked("g1")
    be1 = stacked("be1")
    g2 = stacked("g2")
    be2 = stacked("be2")

    kernel = _make_fused_kernel(B, S)

    def enc_spec(arr):
        nd = arr.ndim
        return pl.BlockSpec((1,) + arr.shape[1:], lambda e, nd=nd: (e,) + (0,) * (nd - 1))

    grid_spec = pltpu.PrefetchScalarGridSpec(
        num_scalar_prefetch=0,
        grid=(2,),                      # one step per encoder (A, then B + head)
        in_specs=[
            enc_spec(x), enc_spec(pad_bias),
            enc_spec(wq), enc_spec(wk), enc_spec(wv), enc_spec(wo),
            enc_spec(w1), enc_spec(b1), enc_spec(w2), enc_spec(b2),
            enc_spec(g1), enc_spec(be1), enc_spec(g2), enc_spec(be2),
            pl.BlockSpec((1, D_MODEL), lambda e: (0, 0)),     # head weight [1, D]
            pl.BlockSpec((1, 1), lambda e: (0, 0)),           # head bias   [1, 1]
        ],
        out_specs=pl.BlockSpec((B, 1), lambda e: (0, 0)),
        scratch_shapes=[pltpu.VMEM((B * S, D_MODEL), jnp.float32)],
    )

    # TODO(synk): on v7x the two encoders could run on the two TensorCores with a
    # "parallel" axis, but that would forbid the VMEM carry that fuses the head;
    # full fusion (single launch, no HBM writeback) was the higher-value choice.
    return pl.pallas_call(
        kernel,
        out_shape=jax.ShapeDtypeStruct((B, 1), jnp.float32),
        grid_spec=grid_spec,
        compiler_params=pltpu.CompilerParams(
            dimension_semantics=("arbitrary",)),   # step 1 consumes step 0's VMEM carry
    )(x, pad_bias, wq, wk, wv, wo, w1, b1, w2, b2, g1, be1, g2, be2,
      params["fc_w"], params["fc_b"])


# ----------------------------- main ---------------------------------------------
if __name__ == "__main__":
    B, S = 2, 8
    VOCAB_SIZE = 32
    MAX_LEN = 64

    key = jax.random.PRNGKey(0)
    k_params, k_a, k_b = jax.random.split(key, 3)

    params = init_transformer_params(k_params, VOCAB_SIZE, MAX_LEN)

    # token ids in [0, VOCAB_SIZE); id 0 acts as padding (masked in attention)
    input_a = jax.random.randint(k_a, (B, S), 0, VOCAB_SIZE, dtype=jnp.int32)
    input_b = jax.random.randint(k_b, (B, S), 0, VOCAB_SIZE, dtype=jnp.int32)

    out = transformer_forward(params, input_a, input_b)
    out = jax.block_until_ready(out)

    assert out.shape == (B, 1)
    assert bool(jnp.all(jnp.isfinite(out)))
    assert bool(jnp.all((out > 0.0) & (out < 1.0)))   # sigmoid output range
    print("KERNEL_OK")
</pallas_src>

<mosaic_0001>
module attributes {stable_mosaic.version = 11 : i64} {
  func.func @kernel(%arg0: i32, %arg1: memref<1x16x64xf32, #tpu.memory_space<vmem>>, %arg2: memref<1x2x8xf32, #tpu.memory_space<vmem>>, %arg3: memref<1x64x512xbf16, #tpu.memory_space<vmem>>, %arg4: memref<1x64x512xbf16, #tpu.memory_space<vmem>>, %arg5: memref<1x64x512xbf16, #tpu.memory_space<vmem>>, %arg6: memref<1x512x64xbf16, #tpu.memory_space<vmem>>, %arg7: memref<1x64x256xbf16, #tpu.memory_space<vmem>>, %arg8: memref<1x1x256xf32, #tpu.memory_space<vmem>>, %arg9: memref<1x256x64xbf16, #tpu.memory_space<vmem>>, %arg10: memref<1x1x64xf32, #tpu.memory_space<vmem>>, %arg11: memref<1x1x64xf32, #tpu.memory_space<vmem>>, %arg12: memref<1x1x64xf32, #tpu.memory_space<vmem>>, %arg13: memref<1x1x64xf32, #tpu.memory_space<vmem>>, %arg14: memref<1x1x64xf32, #tpu.memory_space<vmem>>, %arg15: memref<1x64xf32, #tpu.memory_space<vmem>>, %arg16: memref<1x1xf32, #tpu.memory_space<vmem>>, %arg17: memref<2x1xf32, #tpu.memory_space<vmem>>, %arg18: memref<16x64xf32, #tpu.memory_space<vmem>>) attributes {dimension_semantics = [#tpu.dimension_semantics<arbitrary>], iteration_bounds = array<i64: 2>, scalar_prefetch = 0 : i64, scratch_operands = 1 : i64, tpu.core_type = #tpu.core_type<tc>, window_params = [{transform_indices = @transform_0, window_bounds = array<i64: 1, 16, 64>}, {transform_indices = @transform_1, window_bounds = array<i64: 1, 2, 8>}, {transform_indices = @transform_2, window_bounds = array<i64: 1, 64, 512>}, {transform_indices = @transform_3, window_bounds = array<i64: 1, 64, 512>}, {transform_indices = @transform_4, window_bounds = array<i64: 1, 64, 512>}, {transform_indices = @transform_5, window_bounds = array<i64: 1, 512, 64>}, {transform_indices = @transform_6, window_bounds = array<i64: 1, 64, 256>}, {transform_indices = @transform_7, window_bounds = array<i64: 1, 1, 256>}, {transform_indices = @transform_8, window_bounds = array<i64: 1, 256, 64>}, {transform_indices = @transform_9, window_bounds = array<i64: 1, 1, 64>}, {transform_indices = @transform_10, window_bounds = array<i64: 1, 1, 64>}, {transform_indices = @transform_11, window_bounds = array<i64: 1, 1, 64>}, {transform_indices = @transform_12, window_bounds = array<i64: 1, 1, 64>}, {transform_indices = @transform_13, window_bounds = array<i64: 1, 1, 64>}, {pipeline_mode = #tpu.pipeline_mode<synchronous>, transform_indices = @transform_14, window_bounds = array<i64: 1, 64>}, {pipeline_mode = #tpu.pipeline_mode<synchronous>, transform_indices = @transform_15, window_bounds = array<i64: 1, 1>}, {pipeline_mode = #tpu.pipeline_mode<synchronous>, transform_indices = @transform_16, window_bounds = array<i64: 2, 1>}]} {
    %c0 = arith.constant 0 : index
    %c0_0 = arith.constant 0 : index
    %c0_1 = arith.constant 0 : index
    %0 = vector.load %arg1[%c0, %c0_0, %c0_1] : memref<1x16x64xf32, #tpu.memory_space<vmem>>, vector<1x16x64xf32>
    %1 = vector.shape_cast %0 : vector<1x16x64xf32> to vector<16x64xf32>
    %2 = arith.truncf %1 : vector<16x64xf32> to vector<16x64xbf16>
    %c0_2 = arith.constant 0 : index
    %c0_3 = arith.constant 0 : index
    %c0_4 = arith.constant 0 : index
    %3 = vector.load %arg3[%c0_2, %c0_3, %c0_4] : memref<1x64x512xbf16, #tpu.memory_space<vmem>>, vector<1x64x512xbf16>
    %4 = vector.shape_cast %3 : vector<1x64x512xbf16> to vector<64x512xbf16>
    %cst = arith.constant dense<0.000000e+00> : vector<16x512xf32>
    %5 = tpu.matmul %2, %4, %cst {dimension_numbers = #tpu.dot_dimension_numbers<[1], [0], [0], [1], [0, 0, 1, 1], [], []>} : vector<16x64xbf16>, vector<64x512xbf16>, vector<16x512xf32> -> vector<16x512xf32>
    %cst_5 = arith.constant 1.250000e-01 : f32
    %6 = vector.broadcast %cst_5 : f32 to vector<16x512xf32>
    %7 = arith.mulf %5, %6 : vector<16x512xf32>
    %c0_6 = arith.constant 0 : index
    %c0_7 = arith.constant 0 : index
    %c0_8 = arith.constant 0 : index
    %8 = vector.load %arg4[%c0_6, %c0_7, %c0_8] : memref<1x64x512xbf16, #tpu.memory_space<vmem>>, vector<1x64x512xbf16>
    %9 = vector.shape_cast %8 : vector<1x64x512xbf16> to vector<64x512xbf16>
    %cst_9 = arith.constant dense<0.000000e+00> : vector<16x512xf32>
    %10 = tpu.matmul %2, %9, %cst_9 {dimension_numbers = #tpu.dot_dimension_numbers<[1], [0], [0], [1], [0, 0, 1, 1], [], []>} : vector<16x64xbf16>, vector<64x512xbf16>, vector<16x512xf32> -> vector<16x512xf32>
    %c0_10 = arith.constant 0 : index
    %c0_11 = arith.constant 0 : index
    %c0_12 = arith.constant 0 : index
    %11 = vector.load %arg5[%c0_10, %c0_11, %c0_12] : memref<1x64x512xbf16, #tpu.memory_space<vmem>>, vector<1x64x512xbf16>
    %12 = vector.shape_cast %11 : vector<1x64x512xbf16> to vector<64x512xbf16>
    %cst_13 = arith.constant dense<0.000000e+00> : vector<16x512xf32>
    %13 = tpu.matmul %2, %12, %cst_13 {dimension_numbers = #tpu.dot_dimension_numbers<[1], [0], [0], [1], [0, 0, 1, 1], [], []>} : vector<16x64xbf16>, vector<64x512xbf16>, vector<16x512xf32> -> vector<16x512xf32>
    %14 = arith.truncf %7 : vector<16x512xf32> to vector<16x512xbf16>
    %15 = vector.shape_cast %14 : vector<16x512xbf16> to vector<2x8x512xbf16>
    %16 = arith.truncf %10 : vector<16x512xf32> to vector<16x512xbf16>
    %17 = vector.shape_cast %16 : vector<16x512xbf16> to vector<2x8x512xbf16>
    %18 = arith.truncf %13 : vector<16x512xf32> to vector<16x512xbf16>
    %19 = vector.shape_cast %18 : vector<16x512xbf16> to vector<2x8x512xbf16>
    %c0_14 = arith.constant 0 : index
    %c0_15 = arith.constant 0 : index
    %c0_16 = arith.constant 0 : index
    %20 = vector.load %arg6[%c0_14, %c0_15, %c0_16] : memref<1x512x64xbf16, #tpu.memory_space<vmem>>, vector<1x512x64xbf16>
    %21 = vector.shape_cast %20 : vector<1x512x64xbf16> to vector<512x64xbf16>
    %c0_17 = arith.constant 0 : index
    %c0_18 = arith.constant 0 : index
    %c0_19 = arith.constant 0 : index
    %22 = vector.load %arg2[%c0_17, %c0_18, %c0_19] : memref<1x2x8xf32, #tpu.memory_space<vmem>>, vector<1x2x8xf32>
    %23 = vector.shape_cast %22 : vector<1x2x8xf32> to vector<2x8xf32>
    %24 = vector.shape_cast %23 : vector<2x8xf32> to vector<2x1x8xf32>
    %25 = vector.shape_cast %24 : vector<2x1x8xf32> to vector<2x1x8xf32>
    %26 = vector.broadcast %25 : vector<2x1x8xf32> to vector<2x8x8xf32>
    %cst_20 = arith.constant 0.000000e+00 : f32
    %27 = vector.broadcast %cst_20 : f32 to vector<16x64xf32>
    %28 = vector.extract_strided_slice %15 {offsets = [0, 0, 0], sizes = [2, 8, 64], strides = [1, 1, 1]} : vector<2x8x512xbf16> to vector<2x8x64xbf16>
    %29 = vector.extract_strided_slice %17 {offsets = [0, 0, 0], sizes = [2, 8, 64], strides = [1, 1, 1]} : vector<2x8x512xbf16> to vector<2x8x64xbf16>
    %30 = vector.extract_strided_slice %19 {offsets = [0, 0, 0], sizes = [2, 8, 64], strides = [1, 1, 1]} : vector<2x8x512xbf16> to vector<2x8x64xbf16>
    "tpu.trace_start"() <{level = 10 : i32, message = "bqd,bkd->bqk"}> : () -> ()
    %cst_21 = arith.constant dense<0.000000e+00> : vector<2x8x8xf32>
    %31 = tpu.matmul %28, %29, %cst_21 {dimension_numbers = #tpu.dot_dimension_numbers<[2], [2], [1], [1], [0, 0, 0, 1, 1, 1], [0], [0]>} : vector<2x8x64xbf16>, vector<2x8x64xbf16>, vector<2x8x8xf32> -> vector<2x8x8xf32>
    "tpu.trace_stop"() : () -> ()
    %32 = arith.addf %31, %26 : vector<2x8x8xf32>
    %cst_22 = arith.constant dense<0xFF800000> : vector<2x8xf32>
    %33 = vector.multi_reduction <maximumf>, %32, %cst_22 [2] : vector<2x8x8xf32> to vector<2x8xf32>
    %34 = vector.shape_cast %33 : vector<2x8xf32> to vector<2x8x1xf32>
    %35 = vector.broadcast %34 : vector<2x8x1xf32> to vector<2x8x8xf32>
    %36 = arith.subf %32, %35 : vector<2x8x8xf32>
    %37 = math.exp %36 : vector<2x8x8xf32>
    %cst_23 = arith.constant dense<0.000000e+00> : vector<2x8xf32>
    %38 = vector.multi_reduction <add>, %37, %cst_23 [2] : vector<2x8x8xf32> to vector<2x8xf32>
    %39 = vector.shape_cast %38 : vector<2x8xf32> to vector<2x8x1xf32>
    %40 = tpu.reciprocal %39 {approx = true} : vector<2x8x1xf32> -> vector<2x8x1xf32>
    %41 = vector.broadcast %40 : vector<2x8x1xf32> to vector<2x8x8xf32>
    %42 = arith.mulf %37, %41 : vector<2x8x8xf32>
    %43 = arith.truncf %42 : vector<2x8x8xf32> to vector<2x8x8xbf16>
    "tpu.trace_start"() <{level = 10 : i32, message = "bqk,bkd->bqd"}> : () -> ()
    %cst_24 = arith.constant dense<0.000000e+00> : vector<2x8x64xf32>
    %44 = tpu.matmul %43, %30, %cst_24 {dimension_numbers = #tpu.dot_dimension_numbers<[2], [1], [1], [2], [0, 0, 0, 1, 1, 2], [0], [0]>} : vector<2x8x8xbf16>, vector<2x8x64xbf16>, vector<2x8x64xf32> -> vector<2x8x64xf32>
    "tpu.trace_stop"() : () -> ()
    %45 = vector.shape_cast %44 : vector<2x8x64xf32> to vector<16x64xf32>
    %46 = arith.truncf %45 : vector<16x64xf32> to vector<16x64xbf16>
    %47 = vector.extract_strided_slice %21 {offsets = [0, 0], sizes = [64, 64], strides = [1, 1]} : vector<512x64xbf16> to vector<64x64xbf16>
    %cst_25 = arith.constant dense<0.000000e+00> : vector<16x64xf32>
    %48 = tpu.matmul %46, %47, %cst_25 {dimension_numbers = #tpu.dot_dimension_numbers<[1], [0], [0], [1], [0, 0, 1, 1], [], []>} : vector<16x64xbf16>, vector<64x64xbf16>, vector<16x64xf32> -> vector<16x64xf32>
    %49 = arith.addf %27, %48 : vector<16x64xf32>
    %50 = vector.extract_strided_slice %15 {offsets = [0, 0, 64], sizes = [2, 8, 64], strides = [1, 1, 1]} : vector<2x8x512xbf16> to vector<2x8x64xbf16>
    %51 = vector.extract_strided_slice %17 {offsets = [0, 0, 64], sizes = [2, 8, 64], strides = [1, 1, 1]} : vector<2x8x512xbf16> to vector<2x8x64xbf16>
    %52 = vector.extract_strided_slice %19 {offsets = [0, 0, 64], sizes = [2, 8, 64], strides = [1, 1, 1]} : vector<2x8x512xbf16> to vector<2x8x64xbf16>
    "tpu.trace_start"() <{level = 10 : i32, message = "bqd,bkd->bqk"}> : () -> ()
    %cst_26 = arith.constant dense<0.000000e+00> : vector<2x8x8xf32>
    %53 = tpu.matmul %50, %51, %cst_26 {dimension_numbers = #tpu.dot_dimension_numbers<[2], [2], [1], [1], [0, 0, 0, 1, 1, 1], [0], [0]>} : vector<2x8x64xbf16>, vector<2x8x64xbf16>, vector<2x8x8xf32> -> vector<2x8x8xf32>
    "tpu.trace_stop"() : () -> ()
    %54 = arith.addf %53, %26 : vector<2x8x8xf32>
    %cst_27 = arith.constant dense<0xFF800000> : vector<2x8xf32>
    %55 = vector.multi_reduction <maximumf>, %54, %cst_27 [2] : vector<2x8x8xf32> to vector<2x8xf32>
    %56 = vector.shape_cast %55 : vector<2x8xf32> to vector<2x8x1xf32>
    %57 = vector.broadcast %56 : vector<2x8x1xf32> to vector<2x8x8xf32>
    %58 = arith.subf %54, %57 : vector<2x8x8xf32>
    %59 = math.exp %58 : vector<2x8x8xf32>
    %cst_28 = arith.constant dense<0.000000e+00> : vector<2x8xf32>
    %60 = vector.multi_reduction <add>, %59, %cst_28 [2] : vector<2x8x8xf32> to vector<2x8xf32>
    %61 = vector.shape_cast %60 : vector<2x8xf32> to vector<2x8x1xf32>
    %62 = tpu.reciprocal %61 {approx = true} : vector<2x8x1xf32> -> vector<2x8x1xf32>
    %63 = vector.broadcast %62 : vector<2x8x1xf32> to vector<2x8x8xf32>
    %64 = arith.mulf %59, %63 : vector<2x8x8xf32>
    %65 = arith.truncf %64 : vector<2x8x8xf32> to vector<2x8x8xbf16>
    "tpu.trace_start"() <{level = 10 : i32, message = "bqk,bkd->bqd"}> : () -> ()
    %cst_29 = arith.constant dense<0.000000e+00> : vector<2x8x64xf32>
    %66 = tpu.matmul %65, %52, %cst_29 {dimension_numbers = #tpu.dot_dimension_numbers<[2], [1], [1], [2], [0, 0, 0, 1, 1, 2], [0], [0]>} : vector<2x8x8xbf16>, vector<2x8x64xbf16>, vector<2x8x64xf32> -> vector<2x8x64xf32>
    "tpu.trace_stop"() : () -> ()
    %67 = vector.shape_cast %66 : vector<2x8x64xf32> to vector<16x64xf32>
    %68 = arith.truncf %67 : vector<16x64xf32> to vector<16x64xbf16>
    %69 = vector.extract_strided_slice %21 {offsets = [64, 0], sizes = [64, 64], strides = [1, 1]} : vector<512x64xbf16> to vector<64x64xbf16>
    %cst_30 = arith.constant dense<0.000000e+00> : vector<16x64xf32>
    %70 = tpu.matmul %68, %69, %cst_30 {dimension_numbers = #tpu.dot_dimension_numbers<[1], [0], [0], [1], [0, 0, 1, 1], [], []>} : vector<16x64xbf16>, vector<64x64xbf16>, vector<16x64xf32> -> vector<16x64xf32>
    %71 = arith.addf %49, %70 : vector<16x64xf32>
    %72 = vector.extract_strided_slice %15 {offsets = [0, 0, 128], sizes = [2, 8, 64], strides = [1, 1, 1]} : vector<2x8x512xbf16> to vector<2x8x64xbf16>
    %73 = vector.extract_strided_slice %17 {offsets = [0, 0, 128], sizes = [2, 8, 64], strides = [1, 1, 1]} : vector<2x8x512xbf16> to vector<2x8x64xbf16>
    %74 = vector.extract_strided_slice %19 {offsets = [0, 0, 128], sizes = [2, 8, 64], strides = [1, 1, 1]} : vector<2x8x512xbf16> to vector<2x8x64xbf16>
    "tpu.trace_start"() <{level = 10 : i32, message = "bqd,bkd->bqk"}> : () -> ()
    %cst_31 = arith.constant dense<0.000000e+00> : vector<2x8x8xf32>
    %75 = tpu.matmul %72, %73, %cst_31 {dimension_numbers = #tpu.dot_dimension_numbers<[2], [2], [1], [1], [0, 0, 0, 1, 1, 1], [0], [0]>} : vector<2x8x64xbf16>, vector<2x8x64xbf16>, vector<2x8x8xf32> -> vector<2x8x8xf32>
    "tpu.trace_stop"() : () -> ()
    %76 = arith.addf %75, %26 : vector<2x8x8xf32>
    %cst_32 = arith.constant dense<0xFF800000> : vector<2x8xf32>
    %77 = vector.multi_reduction <maximumf>, %76, %cst_32 [2] : vector<2x8x8xf32> to vector<2x8xf32>
    %78 = vector.shape_cast %77 : vector<2x8xf32> to vector<2x8x1xf32>
    %79 = vector.broadcast %78 : vector<2x8x1xf32> to vector<2x8x8xf32>
    %80 = arith.subf %76, %79 : vector<2x8x8xf32>
    %81 = math.exp %80 : vector<2x8x8xf32>
    %cst_33 = arith.constant dense<0.000000e+00> : vector<2x8xf32>
    %82 = vector.multi_reduction <add>, %81, %cst_33 [2] : vector<2x8x8xf32> to vector<2x8xf32>
    %83 = vector.shape_cast %82 : vector<2x8xf32> to vector<2x8x1xf32>
    %84 = tpu.reciprocal %83 {approx = true} : vector<2x8x1xf32> -> vector<2x8x1xf32>
    %85 = vector.broadcast %84 : vector<2x8x1xf32> to vector<2x8x8xf32>
    %86 = arith.mulf %81, %85 : vector<2x8x8xf32>
    %87 = arith.truncf %86 : vector<2x8x8xf32> to vector<2x8x8xbf16>
    "tpu.trace_start"() <{level = 10 : i32, message = "bqk,bkd->bqd"}> : () -> ()
    %cst_34 = arith.constant dense<0.000000e+00> : vector<2x8x64xf32>
    %88 = tpu.matmul %87, %74, %cst_34 {dimension_numbers = #tpu.dot_dimension_numbers<[2], [1], [1], [2], [0, 0, 0, 1, 1, 2], [0], [0]>} : vector<2x8x8xbf16>, vector<2x8x64xbf16>, vector<2x8x64xf32> -> vector<2x8x64xf32>
    "tpu.trace_stop"() : () -> ()
    %89 = vector.shape_cast %88 : vector<2x8x64xf32> to vector<16x64xf32>
    %90 = arith.truncf %89 : vector<16x64xf32> to vector<16x64xbf16>
    %91 = vector.extract_strided_slice %21 {offsets = [128, 0], sizes = [64, 64], strides = [1, 1]} : vector<512x64xbf16> to vector<64x64xbf16>
    %cst_35 = arith.constant dense<0.000000e+00> : vector<16x64xf32>
    %92 = tpu.matmul %90, %91, %cst_35 {dimension_numbers = #tpu.dot_dimension_numbers<[1], [0], [0], [1], [0, 0, 1, 1], [], []>} : vector<16x64xbf16>, vector<64x64xbf16>, vector<16x64xf32> -> vector<16x64xf32>
    %93 = arith.addf %71, %92 : vector<16x64xf32>
    %94 = vector.extract_strided_slice %15 {offsets = [0, 0, 192], sizes = [2, 8, 64], strides = [1, 1, 1]} : vector<2x8x512xbf16> to vector<2x8x64xbf16>
    %95 = vector.extract_strided_slice %17 {offsets = [0, 0, 192], sizes = [2, 8, 64], strides = [1, 1, 1]} : vector<2x8x512xbf16> to vector<2x8x64xbf16>
    %96 = vector.extract_strided_slice %19 {offsets = [0, 0, 192], sizes = [2, 8, 64], strides = [1, 1, 1]} : vector<2x8x512xbf16> to vector<2x8x64xbf16>
    "tpu.trace_start"() <{level = 10 : i32, message = "bqd,bkd->bqk"}> : () -> ()
    %cst_36 = arith.constant dense<0.000000e+00> : vector<2x8x8xf32>
    %97 = tpu.matmul %94, %95, %cst_36 {dimension_numbers = #tpu.dot_dimension_numbers<[2], [2], [1], [1], [0, 0, 0, 1, 1, 1], [0], [0]>} : vector<2x8x64xbf16>, vector<2x8x64xbf16>, vector<2x8x8xf32> -> vector<2x8x8xf32>
    "tpu.trace_stop"() : () -> ()
    %98 = arith.addf %97, %26 : vector<2x8x8xf32>
    %cst_37 = arith.constant dense<0xFF800000> : vector<2x8xf32>
    %99 = vector.multi_reduction <maximumf>, %98, %cst_37 [2] : vector<2x8x8xf32> to vector<2x8xf32>
    %100 = vector.shape_cast %99 : vector<2x8xf32> to vector<2x8x1xf32>
    %101 = vector.broadcast %100 : vector<2x8x1xf32> to vector<2x8x8xf32>
    %102 = arith.subf %98, %101 : vector<2x8x8xf32>
    %103 = math.exp %102 : vector<2x8x8xf32>
    %cst_38 = arith.constant dense<0.000000e+00> : vector<2x8xf32>
    %104 = vector.multi_reduction <add>, %103, %cst_38 [2] : vector<2x8x8xf32> to vector<2x8xf32>
    %105 = vector.shape_cast %104 : vector<2x8xf32> to vector<2x8x1xf32>
    %106 = tpu.reciprocal %105 {approx = true} : vector<2x8x1xf32> -> vector<2x8x1xf32>
    %107 = vector.broadcast %106 : vector<2x8x1xf32> to vector<2x8x8xf32>
    %108 = arith.mulf %103, %107 : vector<2x8x8xf32>
    %109 = arith.truncf %108 : vector<2x8x8xf32> to vector<2x8x8xbf16>
    "tpu.trace_start"() <{level = 10 : i32, message = "bqk,bkd->bqd"}> : () -> ()
    %cst_39 = arith.constant dense<0.000000e+00> : vector<2x8x64xf32>
    %110 = tpu.matmul %109, %96, %cst_39 {dimension_numbers = #tpu.dot_dimension_numbers<[2], [1], [1], [2], [0, 0, 0, 1, 1, 2], [0], [0]>} : vector<2x8x8xbf16>, vector<2x8x64xbf16>, vector<2x8x64xf32> -> vector<2x8x64xf32>
    "tpu.trace_stop"() : () -> ()
    %111 = vector.shape_cast %110 : vector<2x8x64xf32> to vector<16x64xf32>
    %112 = arith.truncf %111 : vector<16x64xf32> to vector<16x64xbf16>
    %113 = vector.extract_strided_slice %21 {offsets = [192, 0], sizes = [64, 64], strides = [1, 1]} : vector<512x64xbf16> to vector<64x64xbf16>
    %cst_40 = arith.constant dense<0.000000e+00> : vector<16x64xf32>
    %114 = tpu.matmul %112, %113, %cst_40 {dimension_numbers = #tpu.dot_dimension_numbers<[1], [0], [0], [1], [0, 0, 1, 1], [], []>} : vector<16x64xbf16>, vector<64x64xbf16>, vector<16x64xf32> -> vector<16x64xf32>
    %115 = arith.addf %93, %114 : vector<16x64xf32>
    %116 = vector.extract_strided_slice %15 {offsets = [0, 0, 256], sizes = [2, 8, 64], strides = [1, 1, 1]} : vector<2x8x512xbf16> to vector<2x8x64xbf16>
    %117 = vector.extract_strided_slice %17 {offsets = [0, 0, 256], sizes = [2, 8, 64], strides = [1, 1, 1]} : vector<2x8x512xbf16> to vector<2x8x64xbf16>
    %118 = vector.extract_strided_slice %19 {offsets = [0, 0, 256], sizes = [2, 8, 64], strides = [1, 1, 1]} : vector<2x8x512xbf16> to vector<2x8x64xbf16>
    "tpu.trace_start"() <{level = 10 : i32, message = "bqd,bkd->bqk"}> : () -> ()
    %cst_41 = arith.constant dense<0.000000e+00> : vector<2x8x8xf32>
    %119 = tpu.matmul %116, %117, %cst_41 {dimension_numbers = #tpu.dot_dimension_numbers<[2], [2], [1], [1], [0, 0, 0, 1, 1, 1], [0], [0]>} : vector<2x8x64xbf16>, vector<2x8x64xbf16>, vector<2x8x8xf32> -> vector<2x8x8xf32>
    "tpu.trace_stop"() : () -> ()
    %120 = arith.addf %119, %26 : vector<2x8x8xf32>
    %cst_42 = arith.constant dense<0xFF800000> : vector<2x8xf32>
    %121 = vector.multi_reduction <maximumf>, %120, %cst_42 [2] : vector<2x8x8xf32> to vector<2x8xf32>
    %122 = vector.shape_cast %121 : vector<2x8xf32> to vector<2x8x1xf32>
    %123 = vector.broadcast %122 : vector<2x8x1xf32> to vector<2x8x8xf32>
    %124 = arith.subf %120, %123 : vector<2x8x8xf32>
    %125 = math.exp %124 : vector<2x8x8xf32>
    %cst_43 = arith.constant dense<0.000000e+00> : vector<2x8xf32>
    %126 = vector.multi_reduction <add>, %125, %cst_43 [2] : vector<2x8x8xf32> to vector<2x8xf32>
    %127 = vector.shape_cast %126 : vector<2x8xf32> to vector<2x8x1xf32>
    %128 = tpu.reciprocal %127 {approx = true} : vector<2x8x1xf32> -> vector<2x8x1xf32>
    %129 = vector.broadcast %128 : vector<2x8x1xf32> to vector<2x8x8xf32>
    %130 = arith.mulf %125, %129 : vector<2x8x8xf32>
    %131 = arith.truncf %130 : vector<2x8x8xf32> to vector<2x8x8xbf16>
    "tpu.trace_start"() <{level = 10 : i32, message = "bqk,bkd->bqd"}> : () -> ()
    %cst_44 = arith.constant dense<0.000000e+00> : vector<2x8x64xf32>
    %132 = tpu.matmul %131, %118, %cst_44 {dimension_numbers = #tpu.dot_dimension_numbers<[2], [1], [1], [2], [0, 0, 0, 1, 1, 2], [0], [0]>} : vector<2x8x8xbf16>, vector<2x8x64xbf16>, vector<2x8x64xf32> -> vector<2x8x64xf32>
    "tpu.trace_stop"() : () -> ()
    %133 = vector.shape_cast %132 : vector<2x8x64xf32> to vector<16x64xf32>
    %134 = arith.truncf %133 : vector<16x64xf32> to vector<16x64xbf16>
    %135 = vector.extract_strided_slice %21 {offsets = [256, 0], sizes = [64, 64], strides = [1, 1]} : vector<512x64xbf16> to vector<64x64xbf16>
    %cst_45 = arith.constant dense<0.000000e+00> : vector<16x64xf32>
    %136 = tpu.matmul %134, %135, %cst_45 {dimension_numbers = #tpu.dot_dimension_numbers<[1], [0], [0], [1], [0, 0, 1, 1], [], []>} : vector<16x64xbf16>, vector<64x64xbf16>, vector<16x64xf32> -> vector<16x64xf32>
    %137 = arith.addf %115, %136 : vector<16x64xf32>
    %138 = vector.extract_strided_slice %15 {offsets = [0, 0, 320], sizes = [2, 8, 64], strides = [1, 1, 1]} : vector<2x8x512xbf16> to vector<2x8x64xbf16>
    %139 = vector.extract_strided_slice %17 {offsets = [0, 0, 320], sizes = [2, 8, 64], strides = [1, 1, 1]} : vector<2x8x512xbf16> to vector<2x8x64xbf16>
    %140 = vector.extract_strided_slice %19 {offsets = [0, 0, 320], sizes = [2, 8, 64], strides = [1, 1, 1]} : vector<2x8x512xbf16> to vector<2x8x64xbf16>
    "tpu.trace_start"() <{level = 10 : i32, message = "bqd,bkd->bqk"}> : () -> ()
    %cst_46 = arith.constant dense<0.000000e+00> : vector<2x8x8xf32>
    %141 = tpu.matmul %138, %139, %cst_46 {dimension_numbers = #tpu.dot_dimension_numbers<[2], [2], [1], [1], [0, 0, 0, 1, 1, 1], [0], [0]>} : vector<2x8x64xbf16>, vector<2x8x64xbf16>, vector<2x8x8xf32> -> vector<2x8x8xf32>
    "tpu.trace_stop"() : () -> ()
    %142 = arith.addf %141, %26 : vector<2x8x8xf32>
    %cst_47 = arith.constant dense<0xFF800000> : vector<2x8xf32>
    %143 = vector.multi_reduction <maximumf>, %142, %cst_47 [2] : vector<2x8x8xf32> to vector<2x8xf32>
    %144 = vector.shape_cast %143 : vector<2x8xf32> to vector<2x8x1xf32>
    %145 = vector.broadcast %144 : vector<2x8x1xf32> to vector<2x8x8xf32>
    %146 = arith.subf %142, %145 : vector<2x8x8xf32>
    %147 = math.exp %146 : vector<2x8x8xf32>
    %cst_48 = arith.constant dense<0.000000e+00> : vector<2x8xf32>
    %148 = vector.multi_reduction <add>, %147, %cst_48 [2] : vector<2x8x8xf32> to vector<2x8xf32>
    %149 = vector.shape_cast %148 : vector<2x8xf32> to vector<2x8x1xf32>
    %150 = tpu.reciprocal %149 {approx = true} : vector<2x8x1xf32> -> vector<2x8x1xf32>
    %151 = vector.broadcast %150 : vector<2x8x1xf32> to vector<2x8x8xf32>
    %152 = arith.mulf %147, %151 : vector<2x8x8xf32>
    %153 = arith.truncf %152 : vector<2x8x8xf32> to vector<2x8x8xbf16>
    "tpu.trace_start"() <{level = 10 : i32, message = "bqk,bkd->bqd"}> : () -> ()
    %cst_49 = arith.constant dense<0.000000e+00> : vector<2x8x64xf32>
    %154 = tpu.matmul %153, %140, %cst_49 {dimension_numbers = #tpu.dot_dimension_numbers<[2], [1], [1], [2], [0, 0, 0, 1, 1, 2], [0], [0]>} : vector<2x8x8xbf16>, vector<2x8x64xbf16>, vector<2x8x64xf32> -> vector<2x8x64xf32>
    "tpu.trace_stop"() : () -> ()
    %155 = vector.shape_cast %154 : vector<2x8x64xf32> to vector<16x64xf32>
    %156 = arith.truncf %155 : vector<16x64xf32> to vector<16x64xbf16>
    %157 = vector.extract_strided_slice %21 {offsets = [320, 0], sizes = [64, 64], strides = [1, 1]} : vector<512x64xbf16> to vector<64x64xbf16>
    %cst_50 = arith.constant dense<0.000000e+00> : vector<16x64xf32>
    %158 = tpu.matmul %156, %157, %cst_50 {dimension_numbers = #tpu.dot_dimension_numbers<[1], [0], [0], [1], [0, 0, 1, 1], [], []>} : vector<16x64xbf16>, vector<64x64xbf16>, vector<16x64xf32> -> vector<16x64xf32>
    %159 = arith.addf %137, %158 : vector<16x64xf32>
    %160 = vector.extract_strided_slice %15 {offsets = [0, 0, 384], sizes = [2, 8, 64], strides = [1, 1, 1]} : vector<2x8x512xbf16> to vector<2x8x64xbf16>
    %161 = vector.extract_strided_slice %17 {offsets = [0, 0, 384], sizes = [2, 8, 64], strides = [1, 1, 1]} : vector<2x8x512xbf16> to vector<2x8x64xbf16>
    %162 = vector.extract_strided_slice %19 {offsets = [0, 0, 384], sizes = [2, 8, 64], strides = [1, 1, 1]} : vector<2x8x512xbf16> to vector<2x8x64xbf16>
    "tpu.trace_start"() <{level = 10 : i32, message = "bqd,bkd->bqk"}> : () -> ()
    %cst_51 = arith.constant dense<0.000000e+00> : vector<2x8x8xf32>
    %163 = tpu.matmul %160, %161, %cst_51 {dimension_numbers = #tpu.dot_dimension_numbers<[2], [2], [1], [1], [0, 0, 0, 1, 1, 1], [0], [0]>} : vector<2x8x64xbf16>, vector<2x8x64xbf16>, vector<2x8x8xf32> -> vector<2x8x8xf32>
    "tpu.trace_stop"() : () -> ()
    %164 = arith.addf %163, %26 : vector<2x8x8xf32>
    %cst_52 = arith.constant dense<0xFF800000> : vector<2x8xf32>
    %165 = vector.multi_reduction <maximumf>, %164, %cst_52 [2] : vector<2x8x8xf32> to vector<2x8xf32>
    %166 = vector.shape_cast %165 : vector<2x8xf32> to vector<2x8x1xf32>
    %167 = vector.broadcast %166 : vector<2x8x1xf32> to vector<2x8x8xf32>
    %168 = arith.subf %164, %167 : vector<2x8x8xf32>
    %169 = math.exp %168 : vector<2x8x8xf32>
    %cst_53 = arith.constant dense<0.000000e+00> : vector<2x8xf32>
    %170 = vector.multi_reduction <add>, %169, %cst_53 [2] : vector<2x8x8xf32> to vector<2x8xf32>
    %171 = vector.shape_cast %170 : vector<2x8xf32> to vector<2x8x1xf32>
    %172 = tpu.reciprocal %171 {approx = true} : vector<2x8x1xf32> -> vector<2x8x1xf32>
    %173 = vector.broadcast %172 : vector<2x8x1xf32> to vector<2x8x8xf32>
    %174 = arith.mulf %169, %173 : vector<2x8x8xf32>
    %175 = arith.truncf %174 : vector<2x8x8xf32> to vector<2x8x8xbf16>
    "tpu.trace_start"() <{level = 10 : i32, message = "bqk,bkd->bqd"}> : () -> ()
    %cst_54 = arith.constant dense<0.000000e+00> : vector<2x8x64xf32>
    %176 = tpu.matmul %175, %162, %cst_54 {dimension_numbers = #tpu.dot_dimension_numbers<[2], [1], [1], [2], [0, 0, 0, 1, 1, 2], [0], [0]>} : vector<2x8x8xbf16>, vector<2x8x64xbf16>, vector<2x8x64xf32> -> vector<2x8x64xf32>
    "tpu.trace_stop"() : () -> ()
    %177 = vector.shape_cast %176 : vector<2x8x64xf32> to vector<16x64xf32>
    %178 = arith.truncf %177 : vector<16x64xf32> to vector<16x64xbf16>
    %179 = vector.extract_strided_slice %21 {offsets = [384, 0], sizes = [64, 64], strides = [1, 1]} : vector<512x64xbf16> to vector<64x64xbf16>
    %cst_55 = arith.constant dense<0.000000e+00> : vector<16x64xf32>
    %180 = tpu.matmul %178, %179, %cst_55 {dimension_numbers = #tpu.dot_dimension_numbers<[1], [0], [0], [1], [0, 0, 1, 1], [], []>} : vector<16x64xbf16>, vector<64x64xbf16>, vector<16x64xf32> -> vector<16x64xf32>
    %181 = arith.addf %159, %180 : vector<16x64xf32>
    %182 = vector.extract_strided_slice %15 {offsets = [0, 0, 448], sizes = [2, 8, 64], strides = [1, 1, 1]} : vector<2x8x512xbf16> to vector<2x8x64xbf16>
    %183 = vector.extract_strided_slice %17 {offsets = [0, 0, 448], sizes = [2, 8, 64], strides = [1, 1, 1]} : vector<2x8x512xbf16> to vector<2x8x64xbf16>
    %184 = vector.extract_strided_slice %19 {offsets = [0, 0, 448], sizes = [2, 8, 64], strides = [1, 1, 1]} : vector<2x8x512xbf16> to vector<2x8x64xbf16>
    "tpu.trace_start"() <{level = 10 : i32, message = "bqd,bkd->bqk"}> : () -> ()
    %cst_56 = arith.constant dense<0.000000e+00> : vector<2x8x8xf32>
    %185 = tpu.matmul %182, %183, %cst_56 {dimension_numbers = #tpu.dot_dimension_numbers<[2], [2], [1], [1], [0, 0, 0, 1, 1, 1], [0], [0]>} : vector<2x8x64xbf16>, vector<2x8x64xbf16>, vector<2x8x8xf32> -> vector<2x8x8xf32>
    "tpu.trace_stop"() : () -> ()
    %186 = arith.addf %185, %26 : vector<2x8x8xf32>
    %cst_57 = arith.constant dense<0xFF800000> : vector<2x8xf32>
    %187 = vector.multi_reduction <maximumf>, %186, %cst_57 [2] : vector<2x8x8xf32> to vector<2x8xf32>
    %188 = vector.shape_cast %187 : vector<2x8xf32> to vector<2x8x1xf32>
    %189 = vector.broadcast %188 : vector<2x8x1xf32> to vector<2x8x8xf32>
    %190 = arith.subf %186, %189 : vector<2x8x8xf32>
    %191 = math.exp %190 : vector<2x8x8xf32>
    %cst_58 = arith.constant dense<0.000000e+00> : vector<2x8xf32>
    %192 = vector.multi_reduction <add>, %191, %cst_58 [2] : vector<2x8x8xf32> to vector<2x8xf32>
    %193 = vector.shape_cast %192 : vector<2x8xf32> to vector<2x8x1xf32>
    %194 = tpu.reciprocal %193 {approx = true} : vector<2x8x1xf32> -> vector<2x8x1xf32>
    %195 = vector.broadcast %194 : vector<2x8x1xf32> to vector<2x8x8xf32>
    %196 = arith.mulf %191, %195 : vector<2x8x8xf32>
    %197 = arith.truncf %196 : vector<2x8x8xf32> to vector<2x8x8xbf16>
    "tpu.trace_start"() <{level = 10 : i32, message = "bqk,bkd->bqd"}> : () -> ()
    %cst_59 = arith.constant dense<0.000000e+00> : vector<2x8x64xf32>
    %198 = tpu.matmul %197, %184, %cst_59 {dimension_numbers = #tpu.dot_dimension_numbers<[2], [1], [1], [2], [0, 0, 0, 1, 1, 2], [0], [0]>} : vector<2x8x8xbf16>, vector<2x8x64xbf16>, vector<2x8x64xf32> -> vector<2x8x64xf32>
    "tpu.trace_stop"() : () -> ()
    %199 = vector.shape_cast %198 : vector<2x8x64xf32> to vector<16x64xf32>
    %200 = arith.truncf %199 : vector<16x64xf32> to vector<16x64xbf16>
    %201 = vector.extract_strided_slice %21 {offsets = [448, 0], sizes = [64, 64], strides = [1, 1]} : vector<512x64xbf16> to vector<64x64xbf16>
    %cst_60 = arith.constant dense<0.000000e+00> : vector<16x64xf32>
    %202 = tpu.matmul %200, %201, %cst_60 {dimension_numbers = #tpu.dot_dimension_numbers<[1], [0], [0], [1], [0, 0, 1, 1], [], []>} : vector<16x64xbf16>, vector<64x64xbf16>, vector<16x64xf32> -> vector<16x64xf32>
    %203 = arith.addf %181, %202 : vector<16x64xf32>
    %204 = arith.addf %1, %203 : vector<16x64xf32>
    %cst_61 = arith.constant dense<0.000000e+00> : vector<16xf32>
    %205 = vector.multi_reduction <add>, %204, %cst_61 [1] : vector<16x64xf32> to vector<16xf32>
    %206 = vector.shape_cast %205 : vector<16xf32> to vector<16x1xf32>
    %cst_62 = arith.constant 6.400000e+01 : f32
    %207 = vector.broadcast %cst_62 : f32 to vector<16x1xf32>
    %208 = arith.divf %206, %207 : vector<16x1xf32>
    %209 = vector.broadcast %208 : vector<16x1xf32> to vector<16x64xf32>
    %210 = arith.subf %204, %209 : vector<16x64xf32>
    %211 = arith.mulf %210, %210 : vector<16x64xf32>
    %cst_63 = arith.constant dense<0.000000e+00> : vector<16xf32>
    %212 = vector.multi_reduction <add>, %211, %cst_63 [1] : vector<16x64xf32> to vector<16xf32>
    %213 = vector.shape_cast %212 : vector<16xf32> to vector<16x1xf32>
    %cst_64 = arith.constant 6.400000e+01 : f32
    %214 = vector.broadcast %cst_64 : f32 to vector<16x1xf32>
    %215 = arith.divf %213, %214 : vector<16x1xf32>
    %216 = vector.broadcast %208 : vector<16x1xf32> to vector<16x64xf32>
    %217 = arith.subf %204, %216 : vector<16x64xf32>
    %cst_65 = arith.constant 9.99999974E-6 : f32
    %218 = vector.broadcast %cst_65 : f32 to vector<16x1xf32>
    %219 = arith.addf %215, %218 : vector<16x1xf32>
    %220 = math.rsqrt %219 : vector<16x1xf32>
    %221 = vector.broadcast %220 : vector<16x1xf32> to vector<16x64xf32>
    %222 = arith.mulf %217, %221 : vector<16x64xf32>
    %c0_66 = arith.constant 0 : index
    %c0_67 = arith.constant 0 : index
    %c0_68 = arith.constant 0 : index
    %223 = vector.load %arg11[%c0_66, %c0_67, %c0_68] : memref<1x1x64xf32, #tpu.memory_space<vmem>>, vector<1x1x64xf32>
    %224 = vector.shape_cast %223 : vector<1x1x64xf32> to vector<1x64xf32>
    %225 = vector.broadcast %224 : vector<1x64xf32> to vector<16x64xf32>
    %226 = arith.mulf %222, %225 : vector<16x64xf32>
    %c0_69 = arith.constant 0 : index
    %c0_70 = arith.constant 0 : index
    %c0_71 = arith.constant 0 : index
    %227 = vector.load %arg12[%c0_69, %c0_70, %c0_71] : memref<1x1x64xf32, #tpu.memory_space<vmem>>, vector<1x1x64xf32>
    %228 = vector.shape_cast %227 : vector<1x1x64xf32> to vector<1x64xf32>
    %229 = vector.broadcast %228 : vector<1x64xf32> to vector<16x64xf32>
    %230 = arith.addf %226, %229 : vector<16x64xf32>
    %231 = arith.truncf %230 : vector<16x64xf32> to vector<16x64xbf16>
    %c0_72 = arith.constant 0 : index
    %c0_73 = arith.constant 0 : index
    %c0_74 = arith.constant 0 : index
    %232 = vector.load %arg7[%c0_72, %c0_73, %c0_74] : memref<1x64x256xbf16, #tpu.memory_space<vmem>>, vector<1x64x256xbf16>
    %233 = vector.shape_cast %232 : vector<1x64x256xbf16> to vector<64x256xbf16>
    %cst_75 = arith.constant dense<0.000000e+00> : vector<16x256xf32>
    %234 = tpu.matmul %231, %233, %cst_75 {dimension_numbers = #tpu.dot_dimension_numbers<[1], [0], [0], [1], [0, 0, 1, 1], [], []>} : vector<16x64xbf16>, vector<64x256xbf16>, vector<16x256xf32> -> vector<16x256xf32>
    %c0_76 = arith.constant 0 : index
    %c0_77 = arith.constant 0 : index
    %c0_78 = arith.constant 0 : index
    %235 = vector.load %arg8[%c0_76, %c0_77, %c0_78] : memref<1x1x256xf32, #tpu.memory_space<vmem>>, vector<1x1x256xf32>
    %236 = vector.shape_cast %235 : vector<1x1x256xf32> to vector<1x256xf32>
    %237 = vector.broadcast %236 : vector<1x256xf32> to vector<16x256xf32>
    %238 = arith.addf %234, %237 : vector<16x256xf32>
    %cst_79 = arith.constant 0.000000e+00 : f32
    %239 = vector.broadcast %cst_79 : f32 to vector<16x256xf32>
    %240 = arith.maximumf %238, %239 : vector<16x256xf32>
    %241 = arith.truncf %240 : vector<16x256xf32> to vector<16x256xbf16>
    %c0_80 = arith.constant 0 : index
    %c0_81 = arith.constant 0 : index
    %c0_82 = arith.constant 0 : index
    %242 = vector.load %arg9[%c0_80, %c0_81, %c0_82] : memref<1x256x64xbf16, #tpu.memory_space<vmem>>, vector<1x256x64xbf16>
    %243 = vector.shape_cast %242 : vector<1x256x64xbf16> to vector<256x64xbf16>
    %cst_83 = arith.constant dense<0.000000e+00> : vector<16x64xf32>
    %244 = tpu.matmul %241, %243, %cst_83 {dimension_numbers = #tpu.dot_dimension_numbers<[1], [0], [0], [1], [0, 0, 1, 1], [], []>} : vector<16x256xbf16>, vector<256x64xbf16>, vector<16x64xf32> -> vector<16x64xf32>
    %c0_84 = arith.constant 0 : index
    %c0_85 = arith.constant 0 : index
    %c0_86 = arith.constant 0 : index
    %245 = vector.load %arg10[%c0_84, %c0_85, %c0_86] : memref<1x1x64xf32, #tpu.memory_space<vmem>>, vector<1x1x64xf32>
    %246 = vector.shape_cast %245 : vector<1x1x64xf32> to vector<1x64xf32>
    %247 = vector.broadcast %246 : vector<1x64xf32> to vector<16x64xf32>
    %248 = arith.addf %244, %247 : vector<16x64xf32>
    %249 = arith.addf %230, %248 : vector<16x64xf32>
    %cst_87 = arith.constant dense<0.000000e+00> : vector<16xf32>
    %250 = vector.multi_reduction <add>, %249, %cst_87 [1] : vector<16x64xf32> to vector<16xf32>
    %251 = vector.shape_cast %250 : vector<16xf32> to vector<16x1xf32>
    %cst_88 = arith.constant 6.400000e+01 : f32
    %252 = vector.broadcast %cst_88 : f32 to vector<16x1xf32>
    %253 = arith.divf %251, %252 : vector<16x1xf32>
    %254 = vector.broadcast %253 : vector<16x1xf32> to vector<16x64xf32>
    %255 = arith.subf %249, %254 : vector<16x64xf32>
    %256 = arith.mulf %255, %255 : vector<16x64xf32>
    %cst_89 = arith.constant dense<0.000000e+00> : vector<16xf32>
    %257 = vector.multi_reduction <add>, %256, %cst_89 [1] : vector<16x64xf32> to vector<16xf32>
    %258 = vector.shape_cast %257 : vector<16xf32> to vector<16x1xf32>
    %cst_90 = arith.constant 6.400000e+01 : f32
    %259 = vector.broadcast %cst_90 : f32 to vector<16x1xf32>
    %260 = arith.divf %258, %259 : vector<16x1xf32>
    %261 = vector.broadcast %253 : vector<16x1xf32> to vector<16x64xf32>
    %262 = arith.subf %249, %261 : vector<16x64xf32>
    %cst_91 = arith.constant 9.99999974E-6 : f32
    %263 = vector.broadcast %cst_91 : f32 to vector<16x1xf32>
    %264 = arith.addf %260, %263 : vector<16x1xf32>
    %265 = math.rsqrt %264 : vector<16x1xf32>
    %266 = vector.broadcast %265 : vector<16x1xf32> to vector<16x64xf32>
    %267 = arith.mulf %262, %266 : vector<16x64xf32>
    %c0_92 = arith.constant 0 : index
    %c0_93 = arith.constant 0 : index
    %c0_94 = arith.constant 0 : index
    %268 = vector.load %arg13[%c0_92, %c0_93, %c0_94] : memref<1x1x64xf32, #tpu.memory_space<vmem>>, vector<1x1x64xf32>
    %269 = vector.shape_cast %268 : vector<1x1x64xf32> to vector<1x64xf32>
    %270 = vector.broadcast %269 : vector<1x64xf32> to vector<16x64xf32>
    %271 = arith.mulf %267, %270 : vector<16x64xf32>
    %c0_95 = arith.constant 0 : index
    %c0_96 = arith.constant 0 : index
    %c0_97 = arith.constant 0 : index
    %272 = vector.load %arg14[%c0_95, %c0_96, %c0_97] : memref<1x1x64xf32, #tpu.memory_space<vmem>>, vector<1x1x64xf32>
    %273 = vector.shape_cast %272 : vector<1x1x64xf32> to vector<1x64xf32>
    %274 = vector.broadcast %273 : vector<1x64xf32> to vector<16x64xf32>
    %275 = arith.addf %271, %274 : vector<16x64xf32>
    %c0_i32 = arith.constant 0 : i32
    %276 = arith.cmpi eq, %arg0, %c0_i32 : i32
    %277 = arith.extui %276 : i1 to i32
    %c0_i32_98 = arith.constant 0 : i32
    %278 = arith.cmpi ne, %277, %c0_i32_98 : i32
    scf.if %278 {
      %c0_100 = arith.constant 0 : index
      %c0_101 = arith.constant 0 : index
      %282 = vector.load %arg18[%c0_100, %c0_101] : memref<16x64xf32, #tpu.memory_space<vmem>>, vector<16x64xf32>
      tpu.vector_store %arg18[%c0_100, %c0_101], %275 {strides = array<i32>} : memref<16x64xf32, #tpu.memory_space<vmem>>, vector<16x64xf32>,
    } else {
    }
    %c1_i32 = arith.constant 1 : i32
    %279 = arith.cmpi eq, %arg0, %c1_i32 : i32
    %280 = arith.extui %279 : i1 to i32
    %c0_i32_99 = arith.constant 0 : i32
    %281 = arith.cmpi ne, %280, %c0_i32_99 : i32
    scf.if %281 {
      %c0_100 = arith.constant 0 : index
      %c0_101 = arith.constant 0 : index
      %282 = vector.load %arg18[%c0_100, %c0_101] : memref<16x64xf32, #tpu.memory_space<vmem>>, vector<16x64xf32>
      %283 = arith.mulf %282, %275 : vector<16x64xf32>
      %284 = vector.shape_cast %283 : vector<16x64xf32> to vector<2x8x64xf32>
      %cst_102 = arith.constant dense<0.000000e+00> : vector<2x64xf32>
      %285 = vector.multi_reduction <add>, %284, %cst_102 [1] : vector<2x8x64xf32> to vector<2x64xf32>
      %cst_103 = arith.constant 8.000000e+00 : f32
      %286 = vector.broadcast %cst_103 : f32 to vector<2x64xf32>
      %287 = arith.divf %285, %286 : vector<2x64xf32>
      %c0_104 = arith.constant 0 : index
      %c0_105 = arith.constant 0 : index
      %288 = vector.load %arg15[%c0_104, %c0_105] : memref<1x64xf32, #tpu.memory_space<vmem>>, vector<1x64xf32>
      %289 = vector.broadcast %288 : vector<1x64xf32> to vector<2x64xf32>
      %290 = arith.mulf %287, %289 : vector<2x64xf32>
      %cst_106 = arith.constant dense<0.000000e+00> : vector<2xf32>
      %291 = vector.multi_reduction <add>, %290, %cst_106 [1] : vector<2x64xf32> to vector<2xf32>
      %292 = vector.shape_cast %291 : vector<2xf32> to vector<2x1xf32>
      %c0_107 = arith.constant 0 : index
      %c0_108 = arith.constant 0 : index
      %293 = vector.load %arg16[%c0_107, %c0_108] : memref<1x1xf32, #tpu.memory_space<vmem>>, vector<1x1xf32>
      %294 = vector.broadcast %293 : vector<1x1xf32> to vector<2x1xf32>
      %295 = arith.addf %292, %294 : vector<2x1xf32>
      %cst_109 = arith.constant 0.000000e+00 : f32
      %296 = vector.broadcast %cst_109 : f32 to vector<2x1xf32>
      %297 = arith.subf %296, %295 : vector<2x1xf32>
      %298 = math.exp %297 : vector<2x1xf32>
      %cst_110 = arith.constant 1.000000e+00 : f32
      %299 = vector.broadcast %cst_110 : f32 to vector<2x1xf32>
      %300 = arith.addf %299, %298 : vector<2x1xf32>
      %cst_111 = arith.constant 1.000000e+00 : f32
      %301 = vector.broadcast %cst_111 : f32 to vector<2x1xf32>
      %302 = arith.divf %301, %300 : vector<2x1xf32>
      %c0_112 = arith.constant 0 : index
      %c0_113 = arith.constant 0 : index
      %303 = vector.load %arg17[%c0_112, %c0_113] : memref<2x1xf32, #tpu.memory_space<vmem>>, vector<2x1xf32>
      tpu.vector_store %arg17[%c0_112, %c0_113], %302 {strides = array<i32>} : memref<2x1xf32, #tpu.memory_space<vmem>>, vector<2x1xf32>,
    } else {
    }
    return
  }
  func.func @transform_0(%arg0: i32) -> (i32, i32, i32) {
    %c0_i32 = arith.constant 0 : i32
    %c0_i32_0 = arith.constant 0 : i32
    %c0_i32_1 = arith.constant 0 : i32
    return %arg0, %c0_i32, %c0_i32_0 : i32, i32, i32
  }
  func.func @transform_1(%arg0: i32) -> (i32, i32, i32) {
    %c0_i32 = arith.constant 0 : i32
    %c0_i32_0 = arith.constant 0 : i32
    %c0_i32_1 = arith.constant 0 : i32
    return %arg0, %c0_i32, %c0_i32_0 : i32, i32, i32
  }
  func.func @transform_2(%arg0: i32) -> (i32, i32, i32) {
    %c0_i32 = arith.constant 0 : i32
    %c0_i32_0 = arith.constant 0 : i32
    %c0_i32_1 = arith.constant 0 : i32
    return %arg0, %c0_i32, %c0_i32_0 : i32, i32, i32
  }
  func.func @transform_3(%arg0: i32) -> (i32, i32, i32) {
    %c0_i32 = arith.constant 0 : i32
    %c0_i32_0 = arith.constant 0 : i32
    %c0_i32_1 = arith.constant 0 : i32
    return %arg0, %c0_i32, %c0_i32_0 : i32, i32, i32
  }
  func.func @transform_4(%arg0: i32) -> (i32, i32, i32) {
    %c0_i32 = arith.constant 0 : i32
    %c0_i32_0 = arith.constant 0 : i32
    %c0_i32_1 = arith.constant 0 : i32
    return %arg0, %c0_i32, %c0_i32_0 : i32, i32, i32
  }
  func.func @transform_5(%arg0: i32) -> (i32, i32, i32) {
    %c0_i32 = arith.constant 0 : i32
    %c0_i32_0 = arith.constant 0 : i32
    %c0_i32_1 = arith.constant 0 : i32
    return %arg0, %c0_i32, %c0_i32_0 : i32, i32, i32
  }
  func.func @transform_6(%arg0: i32) -> (i32, i32, i32) {
    %c0_i32 = arith.constant 0 : i32
    %c0_i32_0 = arith.constant 0 : i32
    %c0_i32_1 = arith.constant 0 : i32
    return %arg0, %c0_i32, %c0_i32_0 : i32, i32, i32
  }
  func.func @transform_7(%arg0: i32) -> (i32, i32, i32) {
    %c0_i32 = arith.constant 0 : i32
    %c0_i32_0 = arith.constant 0 : i32
    %c0_i32_1 = arith.constant 0 : i32
    return %arg0, %c0_i32, %c0_i32_0 : i32, i32, i32
  }
  func.func @transform_8(%arg0: i32) -> (i32, i32, i32) {
    %c0_i32 = arith.constant 0 : i32
    %c0_i32_0 = arith.constant 0 : i32
    %c0_i32_1 = arith.constant 0 : i32
    return %arg0, %c0_i32, %c0_i32_0 : i32, i32, i32
  }
  func.func @transform_9(%arg0: i32) -> (i32, i32, i32) {
    %c0_i32 = arith.constant 0 : i32
    %c0_i32_0 = arith.constant 0 : i32
    %c0_i32_1 = arith.constant 0 : i32
    return %arg0, %c0_i32, %c0_i32_0 : i32, i32, i32
  }
  func.func @transform_10(%arg0: i32) -> (i32, i32, i32) {
    %c0_i32 = arith.constant 0 : i32
    %c0_i32_0 = arith.constant 0 : i32
    %c0_i32_1 = arith.constant 0 : i32
    return %arg0, %c0_i32, %c0_i32_0 : i32, i32, i32
  }
  func.func @transform_11(%arg0: i32) -> (i32, i32, i32) {
    %c0_i32 = arith.constant 0 : i32
    %c0_i32_0 = arith.constant 0 : i32
    %c0_i32_1 = arith.constant 0 : i32
    return %arg0, %c0_i32, %c0_i32_0 : i32, i32, i32
  }
  func.func @transform_12(%arg0: i32) -> (i32, i32, i32) {
    %c0_i32 = arith.constant 0 : i32
    %c0_i32_0 = arith.constant 0 : i32
    %c0_i32_1 = arith.constant 0 : i32
    return %arg0, %c0_i32, %c0_i32_0 : i32, i32, i32
  }
  func.func @transform_13(%arg0: i32) -> (i32, i32, i32) {
    %c0_i32 = arith.constant 0 : i32
    %c0_i32_0 = arith.constant 0 : i32
    %c0_i32_1 = arith.constant 0 : i32
    return %arg0, %c0_i32, %c0_i32_0 : i32, i32, i32
  }
  func.func @transform_14(%arg0: i32) -> (i32, i32) {
    %c0_i32 = arith.constant 0 : i32
    %c0_i32_0 = arith.constant 0 : i32
    %c0_i32_1 = arith.constant 0 : i32
    return %c0_i32, %c0_i32_0 : i32, i32
  }
  func.func @transform_15(%arg0: i32) -> (i32, i32) {
    %c0_i32 = arith.constant 0 : i32
    %c0_i32_0 = arith.constant 0 : i32
    %c0_i32_1 = arith.constant 0 : i32
    return %c0_i32, %c0_i32_0 : i32, i32
  }
  func.func @transform_16(%arg0: i32) -> (i32, i32) {
    %c0_i32 = arith.constant 0 : i32
    %c0_i32_0 = arith.constant 0 : i32
    %c0_i32_1 = arith.constant 0 : i32
    return %c0_i32, %c0_i32_0 : i32, i32
  }
}

</mosaic_0001>

<bundles_post_ra>
// kernel: transformer_forward.1
= control target key start
LH: loop header
LB: loop body
LE: loop exit
PB: predicated region body
PF: predicated region fallthrough
CT: control target
= control target key end

     0   :  { %s3973_s23 = smov 0   ;;  %s4608_s0 = inlined_call_operand.vmem [shape: f32[2,16,64], index: 0, kind: input, shape index: {}]   ;;  %s4609_s1 = inlined_call_operand.vmem [shape: f32[2,2,8], index: 1, kind: input, shape index: {}]   ;;  %s4610_s2 = inlined_call_operand.vmem [shape: bf16[2,64,512], index: 2, kind: input, shape index: {}]   ;;  %s4611_s3 = inlined_call_operand.vmem [shape: bf16[2,64,512], index: 3, kind: input, shape index: {}]   ;;  %s4612_s4 = inlined_call_operand.vmem [shape: bf16[2,64,512], index: 4, kind: input, shape index: {}]   ;;  %s4613_s5 = inlined_call_operand.vmem [shape: bf16[2,512,64], index: 5, kind: input, shape index: {}]   ;;  %s4614_s6 = inlined_call_operand.vmem [shape: bf16[2,64,256], index: 6, kind: input, shape index: {}]   ;;  %s4615_s7 = inlined_call_operand.vmem [shape: f32[2,1,256], index: 7, kind: input, shape index: {}]   ;;  %s4616_s8 = inlined_call_operand.vmem [shape: bf16[2,256,64], index: 8, kind: input, shape index: {}]   ;;  %s4617_s9 = inlined_call_operand.vmem [shape: f32[2,1,64], index: 9, kind: input, shape index: {}]   ;;  %s4618_s10 = inlined_call_operand.vmem [shape: f32[2,1,64], index: 10, kind: input, shape index: {}]   ;;  %s4619_s11 = inlined_call_operand.vmem [shape: f32[2,1,64], index: 11, kind: input, shape index: {}]   ;;  %s4620_s12 = inlined_call_operand.vmem [shape: f32[2,1,64], index: 12, kind: input, shape index: {}]   ;;  %s4621_s13 = inlined_call_operand.vmem [shape: f32[2,1,64], index: 13, kind: input, shape index: {}]   ;;  %s4622_s14 = inlined_call_operand.vmem [shape: f32[1,64], index: 14, kind: input, shape index: {}]   ;;  %s4623_s15 = inlined_call_operand.<no memory space> [shape: f32[1,1], index: 15, kind: input, shape index: {}]   ;;  %s4624_s16 = inlined_call_operand.vmem [shape: f32[2,1], index: 16, kind: output, shape index: {}]  }
   0x1   :  { %4625 = sst [smem:[#allocation4_spill]] %s4608_s0  ;;  %v21_v0 = vstv %s4623_s15 }
   0x2   :  { %22 = vst [vmem:[#allocation3] sm:$0x1] %v21_v0 }
   0x3 LB: > { %s3979_s24 = sadd.s32 4294967295, %s3880_s23   ;;  %p3172_p0 = scmp.ge.s32.totalorder %s3880_s23, 1  ;;  %s3880_s23 = sphi %s3973_s23, %s28_s23  }
   0x4   : > { %p577_p1 = scmp.lt.s32.totalorder %s3880_s23, 3 }
   0x6   : > { %p578_p2 = pnand %p3172_p0, %p577_p1 }
   0x7   : > { %p675_p3 = scmp.lt.s32.totalorder (!%p578_p2), %s3979_s24, 1  ;;  %s4626_s20 = sld [smem:[#allocation4_spill]] (!%p578_p2) }
   0x8   : > { %581 = sbr.rel (%p578_p2) target bundleno = 3650 (0xe42), region = 84  ;;  %p3659_p4 = scmp.ne.s32.totalorder (!%p578_p2), %s3979_s24, 0 }
   0xd   : > { %s3985_s15 = scalar_select %p675_p3, %s3979_s24, 1  ;;  %vm833_vm0 = vcmask 523264   ;;  %vm1326_vm1 = vcmask 64512   ;;  %vm1354_vm2 = vcmask 1043456  }
   0xf   : > { %s3988_s25 = sshll.u32 %s3985_s15, 7  ;;  %s3663_s29 = sshll.u32 %s3985_s15, 4 }
  0x10   : > { %s3994_s28 = scalar_lea.vmem %s4610_s2, %s3988_s25  ;;  %s4013_s17 = scalar_lea.vmem %s4611_s3, %s3988_s25 }
  0x11   : > { %v3239_v1 = vld [vmem:[%s3994_s28 + $0x60] sm:$0xf]  ;;  %v3684_v2 = vld [vmem:[%s3994_s28 + $0x6c] sm:$0xf0]  ;;  %v3682_v3 = vld [vmem:[%s3994_s28 + $0x64] sm:$0xf]  ;;  %s4021_s21 = scalar_lea.vmem %s4626_s20, %s3663_s29  ;;  %s4048_s27 = scalar_lea.vmem %s4612_s4, %s3988_s25 }
  0x12   : > { %v3240_v4 = vor.u32 %v3684_v2, %v3239_v1  ;;  %v3241_v5 = vld [vmem:[%s3994_s28 + $0x70] sm:$0xf0]  ;;  %v3223_v6 = vld [vmem:[%s3994_s28 + $0x40] sm:$0xf]  ;;  %v3680_v7 = vld [vmem:[%s3994_s28 + $0x4c] sm:$0xf0]  ;;  %s726_s18 = scalar_lea.vmem %s4619_s11, %s3985_s15  ;;  %s720_s22 = scalar_lea.vmem %s4617_s9, %s3985_s15 }
  0x13   : > { %v3244_v8 = vor.u32 %v3682_v3, %v3241_v5  ;;  %v3678_v9 = vld [vmem:[%s3994_s28 + $0x44] sm:$0xf]  ;;  %v3225_v10 = vld [vmem:[%s3994_s28 + $0x50] sm:$0xf0]  ;;  %v3224_v11 = vor.u32 %v3680_v7, %v3223_v6  ;;  %v3207_v13 = vld [vmem:[%s3994_s28 + $0x20] sm:$0xf] }
  0x14   : > { %841 = vmatpush.bf16.msra.mxu0 %v3240_v4  ;;  %v3228_v12 = vor.u32 %v3678_v9, %v3225_v10  ;;  %v3676_v14 = vld [vmem:[%s3994_s28 + $0x2c] sm:$0xf0]  ;;  %v3674_v15 = vld [vmem:[%s3994_s28 + $0x24] sm:$0xf]  ;;  %v3209_v16 = vld [vmem:[%s3994_s28 + $0x30] sm:$0xf0] }
  0x15   : > { %855 = vmatpush.bf16.msra.mxu1 %v3244_v8  ;;  %v3208_v17 = vor.u32 %v3676_v14, %v3207_v13  ;;  %v3212_v18 = vor.u32 %v3674_v15, %v3209_v16  ;;  %v3191_v19 = vld [vmem:[%s3994_s28] sm:$0xf]  ;;  %v3672_v20 = vld [vmem:[%s3994_s28 + $0xc] sm:$0xf0]  ;;  %v3670_v21 = vld [vmem:[%s3994_s28 + $0x4] sm:$0xf] }
  0x16   : > { %v3193_v22 = vld [vmem:[%s3994_s28 + $0x10] sm:$0xf0]  ;;  %v3307_v23 = vld [vmem:[%s4013_s17 + $0x60] sm:$0xf]  ;;  %v3700_v24 = vld [vmem:[%s4013_s17 + $0x6c] sm:$0xf0]  ;;  %v3192_v27 = vor.u32 %v3672_v20, %v3191_v19 }
  0x17   : > { %v3698_v25 = vld [vmem:[%s4013_s17 + $0x64] sm:$0xf]  ;;  %v3309_v26 = vld [vmem:[%s4013_s17 + $0x70] sm:$0xf0]  ;;  %v735_v29 = vld [vmem:[%s4021_s21 + $0x8] sm:$0xff]  ;;  %v3196_v30 = vor.u32 %v3670_v21, %v3193_v22  ;;  %v3308_v31 = vor.u32 %v3700_v24, %v3307_v23  ;;  %s3882_s29 = smov 64  }
  0x18   : > { %842 = vmatpush.bf16.msra.mxu0 %v3224_v11  ;;  %v734_v28 = vld [vmem:[%s4021_s21] sm:$0xff]  ;;  %v3312_v32 = vor.u32 %v3698_v25, %v3309_v26  ;;  %v3696_v34 = vld [vmem:[%s4013_s17 + $0x4c] sm:$0xf0]  ;;  %v3293_v37 = vld [vmem:[%s4013_s17 + $0x50] sm:$0xf0]  ;;  %s3667_s30 = sshll.u32 %s3985_s15, 8 }
  0x19   : > { %856 = vmatpush.bf16.msra.mxu1 %v3228_v12  ;;  %v3291_v33 = vld [vmem:[%s4013_s17 + $0x40] sm:$0xf]  ;;  %v4032_v35 = vpack.c.bf16 %v735_v29, %v734_v28  ;;  %v3694_v36 = vld [vmem:[%s4013_s17 + $0x44] sm:$0xf]  ;;  %v3692_v41 = vld [vmem:[%s4013_s17 + $0x2c] sm:$0xf0]  ;;  %s4106_s19 = scalar_lea.vmem %s4613_s5, %s3667_s30 }
  0x1a   : > { %v3292_v38 = vor.u32 %v3696_v34, %v3291_v33  ;;  %v3296_v39 = vor.u32 %v3694_v36, %v3293_v37  ;;  %v3275_v40 = vld [vmem:[%s4013_s17 + $0x20] sm:$0xf]  ;;  %v3690_v42 = vld [vmem:[%s4013_s17 + $0x24] sm:$0xf]  ;;  %v3277_v43 = vld [vmem:[%s4013_s17 + $0x30] sm:$0xf0] }
  0x1b   : > { %v3276_v44 = vor.u32 %v3692_v41, %v3275_v40  ;;  %v3280_v45 = vor.u32 %v3690_v42, %v3277_v43  ;;  %v3259_v46 = vld [vmem:[%s4013_s17] sm:$0xf]  ;;  %v3688_v47 = vld [vmem:[%s4013_s17 + $0xc] sm:$0xf0]  ;;  %v3686_v48 = vld [vmem:[%s4013_s17 + $0x4] sm:$0xf] }
  0x1c   : > { %843 = vmatpush.bf16.msra.mxu0 %v3208_v17  ;;  %v3261_v49 = vld [vmem:[%s4013_s17 + $0x10] sm:$0xf0]  ;;  %v3375_v50 = vld [vmem:[%s4048_s27 + $0x60] sm:$0xf]  ;;  %v3716_v51 = vld [vmem:[%s4048_s27 + $0x6c] sm:$0xf0]  ;;  %v3260_v52 = vor.u32 %v3688_v47, %v3259_v46 }
  0x1d   : > { %857 = vmatpush.bf16.msra.mxu1 %v3212_v18  ;;  %v3264_v53 = vor.u32 %v3686_v48, %v3261_v49  ;;  %v3376_v54 = vor.u32 %v3716_v51, %v3375_v50  ;;  %v3359_v55 = vld [vmem:[%s4048_s27 + $0x40] sm:$0xf]  ;;  %v3712_v56 = vld [vmem:[%s4048_s27 + $0x4c] sm:$0xf0]  ;;  %v3714_v60 = vld [vmem:[%s4048_s27 + $0x64] sm:$0xf] }
  0x1e   : > { %v3360_v57 = vor.u32 %v3712_v56, %v3359_v55  ;;  %v3343_v58 = vld [vmem:[%s4048_s27 + $0x20] sm:$0xf]  ;;  %v3708_v59 = vld [vmem:[%s4048_s27 + $0x2c] sm:$0xf0]  ;;  %v3377_v62 = vld [vmem:[%s4048_s27 + $0x70] sm:$0xf0] }
  0x1f   : > { %v3344_v61 = vor.u32 %v3708_v59, %v3343_v58  ;;  %v3380_v63 = vor.u32 %v3714_v60, %v3377_v62  ;;  %v3327_v0 = vld [vmem:[%s4048_s27] sm:$0xf]  ;;  %v3704_v1 = vld [vmem:[%s4048_s27 + $0xc] sm:$0xf0]  ;;  %v3710_v2 = vld [vmem:[%s4048_s27 + $0x44] sm:$0xf] }
  0x20   : > { %844 = vmatpush.bf16.msra.mxu0 %v3192_v27  ;;  %v3328_v3 = vor.u32 %v3704_v1, %v3327_v0  ;;  %v3361_v4 = vld [vmem:[%s4048_s27 + $0x50] sm:$0xf0]  ;;  %v3706_v6 = vld [vmem:[%s4048_s27 + $0x24] sm:$0xf]  ;;  %s3175_s20 = sshll.u32 %s3985_s15, 1 }
  0x21   : > { %858 = vmatpush.bf16.msra.mxu1 %v3196_v30  ;;  %v3364_v5 = vor.u32 %v3710_v2, %v3361_v4  ;;  %v3345_v7 = vld [vmem:[%s4048_s27 + $0x30] sm:$0xf0]  ;;  %v3702_v9 = vld [vmem:[%s4048_s27 + $0x4] sm:$0xf]  ;;  %v3247_v40 = vld [vmem:[%s3994_s28 + $0x68] sm:$0xf]  ;;  %s683_s30 = scalar_lea.vmem %s4609_s1, %s3175_s20 }
  0x22   : > { %v3348_v8 = vor.u32 %v3706_v6, %v3345_v7  ;;  %v3329_v10 = vld [vmem:[%s4048_s27 + $0x10] sm:$0xf0]  ;;  %v3685_v41 = vld [vmem:[%s3994_s28 + $0x74] sm:$0xf0]  ;;  %v3683_v42 = vld [vmem:[%s3994_s28 + $0x6c] sm:$0xf] }
  0x23   : > { %3253 = vmatmul.msk.bf16.vlgmr.msra.gmra.mxu0 %vm833_vm0, %v4032_v35  ;;  %v3332_v11 = vor.u32 %v3702_v9, %v3329_v10  ;;  %v3231_v46 = vld [vmem:[%s3994_s28 + $0x48] sm:$0xf]  ;;  %v3681_v47 = vld [vmem:[%s3994_s28 + $0x54] sm:$0xf0]  ;;  %v3679_v50 = vld [vmem:[%s3994_s28 + $0x4c] sm:$0xf] }
  0x24   : > { %1001 = vmatpush.bf16.msrb.mxu0 %v3308_v31  ;;  %3254 = vmatmul.msk.bf16.vlgmr.msra.gmra.mxu1 %vm833_vm0, %v4032_v35  ;;  %v3233_v51 = vld [vmem:[%s3994_s28 + $0x58] sm:$0xf0]  ;;  %v3215_v56 = vld [vmem:[%s3994_s28 + $0x28] sm:$0xf]  ;;  %v3675_v58 = vld [vmem:[%s3994_s28 + $0x2c] sm:$0xf] }
  0x25   : > { %1015 = vmatpush.bf16.msrb.mxu1 %v3312_v32  ;;  %v3236_v55 = vor.u32 %v3679_v50, %v3233_v51  ;;  %v3217_v59 = vld [vmem:[%s3994_s28 + $0x38] sm:$0xf0]  ;;  %v4128_v62 = vld [vmem:[%s683_s30] sm:$0x3]  ;;  %v3199_v0 = vld [vmem:[%s3994_s28 + $0x8] sm:$0xf]  ;;  %s712_s30 = scalar_lea.vmem %s4615_s7, %s3175_s20 }
  0x26   : > { %v3673_v1 = vld [vmem:[%s3994_s28 + $0x14] sm:$0xf0]  ;;  %v3671_v2 = vld [vmem:[%s3994_s28 + $0xc] sm:$0xf]  ;;  %v3315_v6 = vld [vmem:[%s4013_s17 + $0x68] sm:$0xf] }
  0x27   : > { %v3701_v7 = vld [vmem:[%s4013_s17 + $0x74] sm:$0xf0]  ;;  %v3699_v9 = vld [vmem:[%s4013_s17 + $0x6c] sm:$0xf]  ;;  %v3317_v10 = vld [vmem:[%s4013_s17 + $0x78] sm:$0xf0] }
  0x28   : > { %1002 = vmatpush.bf16.msrb.mxu0 %v3292_v38  ;;  %v3722_v50 = vld [vmem:[%s4106_s19 + $0x20] sm:$0xff] }
  0x29   : > { %1016 = vmatpush.bf16.msrb.mxu1 %v3296_v39 }
  0x2c   : > { %1003 = vmatpush.bf16.msrb.mxu0 %v3276_v44  ;;  %v3248_v44 = vor.u32 %v3685_v41, %v3247_v40  ;;  %v3285_v40 = vld [vmem:[%s4013_s17 + $0x38] sm:$0xf0] }
  0x2d   : > { %1017 = vmatpush.bf16.msrb.mxu1 %v3280_v45  ;;  %v3249_v45 = vld [vmem:[%s3994_s28 + $0x78] sm:$0xf0] }
  0x2e   : > { %v3252_v49 = vor.u32 %v3683_v42, %v3249_v45  ;;  %869 = vmatpush.bf16.msra.mxu2 %v3248_v44  ;;  %v3719_v42 = vld [vmem:[%s4106_s19 + $0x8] sm:$0xff] }
  0x2f   : > { %v3267_v45 = vld [vmem:[%s4013_s17 + $0x8] sm:$0xf] }
  0x30   : > { %1004 = vmatpush.bf16.msrb.mxu0 %v3260_v52  ;;  %v3725_v52 = vld [vmem:[%s4106_s19 + $0x38] sm:$0xff]  ;;  %883 = vmatpush.bf16.msra.mxu3 %v3252_v49 }
  0x31   : > { %1018 = vmatpush.bf16.msrb.mxu1 %v3264_v53  ;;  %v3232_v53 = vor.u32 %v3681_v47, %v3231_v46  ;;  %v3689_v46 = vld [vmem:[%s4013_s17 + $0x14] sm:$0xf0]  ;;  %v3269_v49 = vld [vmem:[%s4013_s17 + $0x18] sm:$0xf0] }
  0x33   : > { %3321 = vmatmul.msk.bf16.vlgmr.msrb.gmra.mxu0 %vm833_vm0, %v4032_v35  ;;  %870 = vmatpush.bf16.msra.mxu2 %v3232_v53  ;;  %v3717_v53 = vld [vmem:[%s4048_s27 + $0x74] sm:$0xf0] }
  0x34   : > { %1153 = vmatpush.bf16.msra.mxu0 %v3376_v54  ;;  %3322 = vmatmul.msk.bf16.vlgmr.msrb.gmra.mxu1 %vm833_vm0, %v4032_v35 }
  0x35   : > { %1167 = vmatpush.bf16.msra.mxu1 %v3380_v63  ;;  %884 = vmatpush.bf16.msra.mxu3 %v3236_v55  ;;  %v3220_v63 = vor.u32 %v3675_v58, %v3217_v59  ;;  %v3385_v55 = vld [vmem:[%s4048_s27 + $0x78] sm:$0xf0] }
  0x38   : > { %1154 = vmatpush.bf16.msra.mxu0 %v3360_v57  ;;  %v3677_v57 = vld [vmem:[%s3994_s28 + $0x34] sm:$0xf0] }
  0x39   : > { %1168 = vmatpush.bf16.msra.mxu1 %v3364_v5  ;;  %v3201_v5 = vld [vmem:[%s3994_s28 + $0x18] sm:$0xf0]  ;;  %885 = vmatpush.bf16.msra.mxu3 %v3220_v63 }
  0x3c   : > { %1155 = vmatpush.bf16.msra.mxu0 %v3344_v61  ;;  %v3216_v61 = vor.u32 %v3677_v57, %v3215_v56  ;;  %v3718_v56 = vld [vmem:[%s4106_s19] sm:$0xff] }
  0x3d   : > { %1169 = vmatpush.bf16.msra.mxu1 %v3348_v8 }
  0x3e   : > { %871 = vmatpush.bf16.msra.mxu2 %v3216_v61 }
  0x40   : > { %1156 = vmatpush.bf16.msra.mxu0 %v3328_v3 }
  0x41   : > { %1170 = vmatpush.bf16.msra.mxu1 %v3332_v11  ;;  %v3721_v11 = vld [vmem:[%s4106_s19 + $0x18] sm:$0xff] }
  0x43   : > { %3389 = vmatmul.msk.bf16.vlgmr.msra.gmra.mxu0 %vm833_vm0, %v4032_v35 }
  0x44   : > { %3390 = vmatmul.msk.bf16.vlgmr.msra.gmra.mxu1 %vm833_vm0, %v4032_v35 }
  0xa0   : > { %v846_v12 = vpop.f32.mrf.mxu0 }
  0xa1   : > { %v860_v13 = vpop.f32.mrf.mxu1  ;;  %v893_v18 = vmul.f32 0.125, %v846_v12  ;;  %v3200_v12 = vor.u32 %v3673_v1, %v3199_v0 }
  0xa2   : > { %v894_v19 = vmul.f32 0.125, %v860_v13  ;;  %v3204_v13 = vor.u32 %v3671_v2, %v3201_v5  ;;  %v3367_v2 = vld [vmem:[%s4048_s27 + $0x48] sm:$0xf]  ;;  %v3369_v5 = vld [vmem:[%s4048_s27 + $0x58] sm:$0xf0] }
  0xa3   : > { %872 = vmatpush.bf16.msra.mxu2 %v3200_v12 }
  0xa4   : > { %v4083_v23 = vpack.c.bf16 %v894_v19, %v893_v18  ;;  %v3697_v18 = vld [vmem:[%s4013_s17 + $0x54] sm:$0xf0]  ;;  %886 = vmatpush.bf16.msra.mxu3 %v3204_v13 }
  0xa6   : > { %v1392_v30 = vunpack.c.l.b16 %v4083_v23  ;;  %3255 = vmatmul.msk.bf16.vlgmr.msra.gmra.mxu2 %vm833_vm0, %v4032_v35 }
  0xa7   : > { %3256 = vmatmul.msk.bf16.vlgmr.msra.gmra.mxu3 %vm833_vm0, %v4032_v35 }
  0xa8   : > { %v848_v14 = vpop.f32.mrf.mxu0  ;;  %v1393_v34 = vpack.c.b16 %v1392_v30, %v1392_v30 }
  0xa9   : > { %v862_v15 = vpop.f32.mrf.mxu1  ;;  %v897_v27 = vmul.f32 0.125, %v848_v14  ;;  %v3316_v14 = vor.u32 %v3701_v7, %v3315_v6 }
  0xaa   : > { %v898_v28 = vmul.f32 0.125, %v862_v15  ;;  %v4142_v15 = vperm.slane %v4128_v62, 0 }
  0xab   : > { %1029 = vmatpush.bf16.msrb.mxu2 %v3316_v14 }
  0xac   : > { %v4094_v33 = vpack.c.bf16 %v898_v28, %v897_v27 }
  0xae   : > { %v1421_v37 = vunpack.c.l.b16 %v4094_v33 }
  0xb0   : > { %v1006_v16 = vpop.f32.mrf.mxu0  ;;  %v1422_v38 = vpack.c.b16 %v1421_v37, %v1421_v37  ;;  %v3693_v37 = vld [vmem:[%s4013_s17 + $0x34] sm:$0xf0] }
  0xb1   : > { %v1020_v17 = vpop.f32.mrf.mxu1 }
  0xb2   : > { %v4078_v20 = vpack.c.bf16 %v1020_v17, %v1006_v16  ;;  %v3320_v16 = vor.u32 %v3699_v9, %v3317_v10  ;;  %v3299_v17 = vld [vmem:[%s4013_s17 + $0x48] sm:$0xf]  ;;  %v3709_v9 = vld [vmem:[%s4048_s27 + $0x34] sm:$0xf0]  ;;  %v3707_v10 = vld [vmem:[%s4048_s27 + $0x2c] sm:$0xf] }
  0xb3   : > { %v3300_v28 = vor.u32 %v3697_v18, %v3299_v17  ;;  %v3705_v17 = vld [vmem:[%s4048_s27 + $0x14] sm:$0xf0]  ;;  %v3703_v18 = vld [vmem:[%s4048_s27 + $0xc] sm:$0xf] }
  0xb4   : > { %v1292_v21 = vsel %vm833_vm0, %v4078_v20, 0  ;;  %v1397_v22 = vunpack.c.l.b16 %v4078_v20  ;;  %1043 = vmatpush.bf16.msrb.mxu3 %v3320_v16  ;;  %v3335_v16 = vld [vmem:[%s4048_s27 + $0x8] sm:$0xf] }
  0xb5   : > { %1301 = vmatpush.bf16.xpose.msrb.mxu0 %v1292_v21  ;;  %v3695_v21 = vld [vmem:[%s4013_s17 + $0x4c] sm:$0xf]  ;;  %1030 = vmatpush.bf16.msrb.mxu2 %v3300_v28 }
  0xb6   : > { %v1398_v24 = vpack.c.b16 %v1397_v22, %v1397_v22  ;;  %v3301_v22 = vld [vmem:[%s4013_s17 + $0x58] sm:$0xf0] }
  0xb8   : > { %1399 = vrot.lane.b32.xlu0 %v1398_v24, %s3882_s29  ;;  %v1008_v25 = vpop.f32.mrf.mxu0  ;;  %v3724_v24 = vld [vmem:[%s4106_s19 + $0x30] sm:$0xff] }
  0xb9   : > { %v1022_v26 = vpop.f32.mrf.mxu1 }
  0xba   : > { %v4086_v29 = vpack.c.bf16 %v1022_v26, %v1008_v25  ;;  %v3720_v26 = vld [vmem:[%s4106_s19 + $0x10] sm:$0xff] }
  0xbc   : > { %3393 = vmatmul.msk.bf16.vlgmr.msrb.gmra.mxu0 %vm833_vm0, %v4083_v23  ;;  %v1311_v31 = vsel %vm833_vm0, %v4086_v29, 0  ;;  %v1426_v32 = vunpack.c.l.b16 %v4086_v29 }
  0xbd   : > { %1320 = vmatpush.bf16.xpose.msrb.mxu1 %v1311_v31 }
  0xbe   : > { %v1427_v36 = vpack.c.b16 %v1426_v32, %v1426_v32 }
  0xc0   : > { %1394 = vrot.lane.b32.xlu0 %v1393_v34, %s3882_s29  ;;  %1428 = vrot.lane.b32.xlu1 %v1427_v36, %s3882_s29  ;;  %v1158_v39 = vpop.f32.mrf.mxu0  ;;  %v3304_v34 = vor.u32 %v3695_v21, %v3301_v22  ;;  %v3283_v36 = vld [vmem:[%s4013_s17 + $0x28] sm:$0xf]  ;;  %v3336_v21 = vor.u32 %v3705_v17, %v3335_v16 }
  0xc1   : > { %v1172_v54 = vpop.f32.mrf.mxu1  ;;  %v3284_v44 = vor.u32 %v3693_v37, %v3283_v36 }
  0xc2   : > { %v4149_v25 = vpack.c.bf16 %v1172_v54, %v1158_v39  ;;  %v3691_v39 = vld [vmem:[%s4013_s17 + $0x2c] sm:$0xf]  ;;  %1044 = vmatpush.bf16.msrb.mxu3 %v3304_v34 }
  0xc3   : > { %v3288_v47 = vor.u32 %v3691_v39, %v3285_v40  ;;  %v3715_v54 = vld [vmem:[%s4048_s27 + $0x6c] sm:$0xf]  ;;  %1031 = vmatpush.bf16.msrb.mxu2 %v3284_v44  ;;  %v1283_v40 = vrot.slane %v4128_v62, 1 }
  0xc4   : > { %3394 = vmatmul.msk.bf16.vlgmr.msrb.gmra.mxu1 %vm833_vm0, %v4094_v33  ;;  %v3388_v1 = vor.u32 %v3715_v54, %v3385_v55 }
  0xc6   : > { %1045 = vmatpush.bf16.msrb.mxu3 %v3288_v47 }
  0xc8   : > { %1423 = vrot.lane.b32.xlu1 %v1422_v38, %s3882_s29  ;;  %v1160_v60 = vpop.f32.mrf.mxu0  ;;  %v3723_v38 = vld [vmem:[%s4106_s19 + $0x28] sm:$0xff] }
  0xc9   : > { %v1174_v19 = vpop.f32.mrf.mxu1 }
  0xca   : > { %v4152_v30 = vpack.c.bf16 %v1174_v19, %v1160_v60  ;;  %v3268_v60 = vor.u32 %v3689_v46, %v3267_v45  ;;  %v3337_v19 = vld [vmem:[%s4048_s27 + $0x18] sm:$0xf0]  ;;  %v1474_v45 = vunpack.c.l.b16 %v4149_v25 }
  0xcb   : > { %v3340_v22 = vor.u32 %v3703_v18, %v3337_v19 }
  0xcc   : > { %v1690_v51 = vrot.slane %v4152_v30, 4  ;;  %1032 = vmatpush.bf16.msrb.mxu2 %v3268_v60  ;;  %v1475_v46 = vpack.c.b16 %v1474_v45, %v1474_v45 }
  0xce   : > { %v1695_v0 = vsel %vm1354_vm2, %v1690_v51, 0 }
  0xcf   : > { %3323 = vmatmul.msk.bf16.vlgmr.msrb.gmra.mxu2 %vm833_vm0, %v4032_v35 }
 0x12a   : > { %v1400_v43 = vpop.permute.xlu0 %1399 }
 0x12b   : > { %v1405_v48 = vsel %vm833_vm0, %v1400_v43, 0  ;;  %v1670_v43 = vrot.slane %v4149_v25, 4 }
 0x12c   : > { %1414 = vmatpush.bf16.xpose.msra.mxu0 %v1405_v48  ;;  %v3687_v48 = vld [vmem:[%s4013_s17 + $0xc] sm:$0xf]  ;;  %s4520_s17 = scalar_lea.vmem %s4616_s8, %s3988_s25 }
 0x12d   : > { %v1675_v57 = vsel %vm1354_vm2, %v1670_v43, 0  ;;  %v3272_v61 = vor.u32 %v3687_v48, %v3269_v49 }
 0x12f   : > { %1046 = vmatpush.bf16.msrb.mxu3 %v3272_v61 }
 0x132   : > { %v1395_v3 = vpop.permute.xlu0 %1394  ;;  %v1429_v4 = vpop.permute.xlu1 %1428  ;;  %3324 = vmatmul.msk.bf16.vlgmr.msrb.gmra.mxu3 %vm833_vm0, %v4032_v35 }
 0x133   : > { %v1434_v8 = vsel %vm833_vm0, %v1429_v4, 0  ;;  %3397 = vmatmul.msk.bf16.vlgmr.msra.gmra.mxu0 %vm833_vm0, %v1395_v3  ;;  %v3713_v3 = vld [vmem:[%s4048_s27 + $0x54] sm:$0xf0]  ;;  %v3711_v4 = vld [vmem:[%s4048_s27 + $0x4c] sm:$0xf]  ;;  %1195 = vmatpush.bf16.msra.mxu3 %v3388_v1 }
 0x134   : > { %1553 = vmatpush.bf16.msrb.mxu0 %v3725_v52  ;;  %1443 = vmatpush.bf16.xpose.msra.mxu1 %v1434_v8  ;;  %v3383_v52 = vld [vmem:[%s4048_s27 + $0x68] sm:$0xf]  ;;  %v3368_v6 = vor.u32 %v3713_v3, %v3367_v2  ;;  %v3372_v7 = vor.u32 %v3711_v4, %v3369_v5 }
 0x135   : > { %v3384_v63 = vor.u32 %v3717_v53, %v3383_v52  ;;  %v3351_v8 = vld [vmem:[%s4048_s27 + $0x28] sm:$0xf] }
 0x136   : > { %v3352_v13 = vor.u32 %v3709_v9, %v3351_v8  ;;  %v874_v8 = vpop.f32.mrf.mxu2  ;;  %v1498_v9 = vunpack.c.l.b16 %v4152_v30 }
 0x137   : > { %1181 = vmatpush.bf16.msra.mxu2 %v3384_v63  ;;  %1196 = vmatpush.bf16.msra.mxu3 %v3372_v7 }
 0x138   : > { %1554 = vmatpush.bf16.msrb.mxu0 %v3724_v24  ;;  %v1356_v24 = vsel %vm1354_vm2, %v4149_v25, 0 }
 0x139   : > { %v1303_v27 = vpop.f32.mrf.mxu0 }
 0x13a   : > { %v4155_v31 = vadd.f32 %v1303_v27, %v4142_v15  ;;  %v1424_v32 = vpop.permute.xlu1 %1423 }
 0x13b   : > { %3398 = vmatmul.msk.bf16.vlgmr.msra.gmra.mxu1 %vm833_vm0, %v1424_v32  ;;  %1182 = vmatpush.bf16.msra.mxu2 %v3368_v6 }
 0x13c   : > { %1594 = vmatpush.bf16.msrb.mxu1 %v3721_v11  ;;  %v1327_v41 = vsel %vm1326_vm1, %v4155_v31, -inf  ;;  %1555 = vmatpush.bf16.msrb.mxu0 %v3723_v38  ;;  %v3353_v11 = vld [vmem:[%s4048_s27 + $0x38] sm:$0xf0]  ;;  %s723_s27 = scalar_lea.vmem %s4618_s10, %s3985_s15 }
 0x13d   : > { %1328 = vmax.xlane.f32.xlu2 %v1327_v41  ;;  %v3356_v14 = vor.u32 %v3707_v10, %v3353_v11  ;;  %v1499_v10 = vpack.c.b16 %v1498_v9, %v1498_v9 }
 0x13e   : > { %v4240_v11 = vpop.f32.mrf.mxu2 }
 0x13f   : > { %1183 = vmatpush.bf16.msra.mxu2 %v3352_v13  ;;  %1197 = vmatpush.bf16.msra.mxu3 %v3356_v14 }
 0x140   : > { %1595 = vmatpush.bf16.msrb.mxu1 %v3720_v26  ;;  %1556 = vmatpush.bf16.msrb.mxu0 %v3722_v50  ;;  %v1375_v26 = vsel %vm1354_vm2, %v4152_v30, 0 }
 0x141   : > { %v1305_v58 = vpop.f32.mrf.mxu0  ;;  %v4183_v59 = vpop.f32.mrf.mxu1 }
 0x143   : > { %1184 = vmatpush.bf16.msra.mxu2 %v3336_v21  ;;  %1198 = vmatpush.bf16.msra.mxu3 %v3340_v22  ;;  %v1604_v22 = vrot.slane %v4083_v23, 4 }
 0x144   : > { %1596 = vmatpush.bf16.msrb.mxu1 %v3719_v42  ;;  %1684 = vmatpush.bf16.msra.mxu0 %v1675_v57 }
 0x146   : > { %3391 = vmatmul.msk.bf16.vlgmr.msra.gmra.mxu2 %vm833_vm0, %v4032_v35  ;;  %3392 = vmatmul.msk.bf16.vlgmr.msra.gmra.mxu3 %vm833_vm0, %v4032_v35  ;;  %v4215_v35 = vperm.slane %v1283_v40, 0 }
 0x147   : > { %1365 = vmatpush.bf16.msrb.mxu2 %v1356_v24  ;;  %1384 = vmatpush.bf16.msrb.mxu3 %v1375_v26  ;;  %v895_v26 = vmul.f32 0.125, %v874_v8 }
 0x148   : > { %1597 = vmatpush.bf16.msrb.mxu1 %v3718_v56  ;;  %v1323_v62 = vadd.f32 %v4183_v59, %v4215_v35  ;;  %v1605_v59 = vrot.slane %v4078_v20, 4 }
 0x149   : > { %v1324_v12 = vpop.f32.mrf.mxu1 }
 0x14a   : > { %v1330_v47 = vsel %vm1326_vm1, %v1323_v62, -inf }
 0x14c   : > { %1704 = vmatpush.bf16.msra.mxu1 %v1695_v0  ;;  %v1610_v0 = vsel %vm833_vm0, %v1605_v59, 0 }
 0x152   : > { %v4243_v12 = vpop.f32.mrf.mxu2 }
 0x15a   : > { %v4245_v13 = vpop.f32.mrf.mxu2 }
 0x1b0   : > { %v1416_v27 = vpop.f32.mrf.mxu0  ;;  %v1329_v28 = vpop.xlane.xlu2 %1328 }
 0x1b1   : > { %v1417_v32 = vadd.f32 %v1416_v27, %v4142_v15  ;;  %v1333_v34 = vsub.f32 %v4155_v31, %v1329_v28  ;;  %v888_v27 = vpop.f32.mrf.mxu3 }
 0x1b2   : > { %v896_v28 = vmul.f32 0.125, %v888_v27 }
 0x1b3   : > { %v1335_v36 = vmul.f32 1.442695, %v1333_v34  ;;  %v1449_v37 = vsel %vm1326_vm1, %v1417_v32, -inf }
 0x1b4   : > { %1450 = vmax.xlane.f32.xlu2 %v1449_v37 }
 0x1b5   : > { %3790 = vpow2.f32 %v1335_v36 }
 0x1b8   : > { %v1418_v38 = vpop.f32.mrf.mxu0  ;;  %v1445_v39 = vpop.f32.mrf.mxu1 }
 0x1b9   : > { %v1446_v43 = vadd.f32 %v1445_v39, %v4215_v35  ;;  %v4255_v40 = vpop.f32.mrf.mxu3 }
 0x1bb   : > { %v3791_v41 = vpop.eup %3790  ;;  %v1452_v31 = vsel %vm1326_vm1, %v1446_v43, -inf }
 0x1bc   : > { %v1339_v42 = vsel %vm1326_vm1, %v3791_v41, 0.0 }
 0x1bd   : > { %1340 = vadd.xlane.f32.xlu0 %v1339_v42  ;;  %v1626_v42 = vrot.slane %v4086_v29, 4 }
 0x1c0   : > { %v1447_v44 = vpop.f32.mrf.mxu1 }
 0x1c1   : > { %v4258_v44 = vpop.f32.mrf.mxu3 }
 0x1c5   : > { %1453 = vmax.xlane.f32.xlu0 %v1452_v31 }
 0x1c9   : > { %v4247_v14 = vpop.f32.mrf.mxu2 }
 0x1cc   : > { %1476 = vrot.lane.b32.xlu2 %v1475_v46, %s3882_s29 }
 0x1d1   : > { %v1188_v19 = vpop.f32.mrf.mxu2 }
 0x1f5   : > { %1331 = vmax.xlane.f32.xlu2 %v1330_v47 }
 0x20d   : > { %1754 = vrot.lane.b32.xlu2 %v4083_v23, %s3882_s29 }
 0x215   : > { %1782 = vrot.lane.b32.xlu2 %v4086_v29, %s3882_s29  ;;  %v4264_v29 = vpop.f32.mrf.mxu3 }
 0x21d   : > { %1779 = vrot.lane.b32.xlu2 %v4094_v33, %s3882_s29 }
 0x227   : > { %v1451_v48 = vpop.xlane.xlu2 %1450 }
 0x228   : > { %v1455_v49 = vsub.f32 %v1417_v32, %v1451_v48  ;;  %v4252_v32 = vpack.c.bf16 %v896_v28, %v895_v26 }
 0x22a   : > { %v1457_v50 = vmul.f32 1.442695, %v1455_v49  ;;  %v3733_v49 = vld [vmem:[%s4106_s19 + $0x78] sm:$0xff] }
 0x22c   : > { %3792 = vpow2.f32 %v1457_v50  ;;  %v1625_v50 = vrot.slane %v4094_v33, 4 }
 0x22f   : > { %v1477_v51 = vpop.permute.xlu2 %1476 }
 0x230   : > { %v1482_v52 = vsel %vm1354_vm2, %v1477_v51, 0  ;;  %v1341_v53 = vpop.xlane.xlu0 %1340  ;;  %v4268_v51 = vpop.f32.mrf.mxu3 }
 0x231   : > { %3794 = vrcp.f32 %v1341_v53  ;;  %1491 = vmatpush.bf16.msra.mxu2 %v1482_v52  ;;  %v3732_v52 = vld [vmem:[%s4106_s19 + $0x70] sm:$0xff]  ;;  %v3731_v53 = vld [vmem:[%s4106_s19 + $0x68] sm:$0xff] }
 0x232   : > { %v3793_v54 = vpop.eup %3792 }
 0x233   : > { %v1461_v55 = vsel %vm1326_vm1, %v3793_v54, 0.0 }
 0x234   : > { %1462 = vadd.xlane.f32.xlu1 %v1461_v55  ;;  %v3730_v55 = vld [vmem:[%s4106_s19 + $0x60] sm:$0xff] }
 0x237   : > { %v3795_v56 = vpop.eup %3794 }
 0x238   : > { %v1347_v57 = vmul.f32 %v3795_v56, %v3791_v41  ;;  %v1454_v58 = vpop.xlane.xlu0 %1453 }
 0x239   : > { %v1456_v60 = vsub.f32 %v1446_v43, %v1454_v58 }
 0x23a   : > { %v1349_v61 = vpack.c.bf16 %v1347_v57, %v1347_v57 }
 0x23b   : > { %v1459_v63 = vmul.f32 1.442695, %v1456_v60 }
 0x23c   : > { %3395 = vmatmul.msk.bf16.vlgmr.msrb.gmra.mxu2 %vm1326_vm1, %v1349_v61 }
 0x23d   : > { %3796 = vpow2.f32 %v1459_v63  ;;  %1619 = vmatpush.bf16.xpose.msrb.mxu2 %v1610_v0 }
 0x243   : > { %v3797_v1 = vpop.eup %3796 }
 0x244   : > { %v1464_v2 = vsel %vm1326_vm1, %v3797_v1, 0.0 }
 0x245   : > { %1465 = vadd.xlane.f32.xlu0 %v1464_v2 }
 0x259   : > { %1757 = vrot.lane.b32.xlu0 %v4078_v20, %s3882_s29 }
 0x268   : > { %v1332_v3 = vpop.xlane.xlu2 %1331 }
 0x269   : > { %v1334_v4 = vsub.f32 %v1323_v62, %v1332_v3  ;;  %v1631_v62 = vsel %vm833_vm0, %v1626_v42, 0  ;;  %v3726_v42 = vld [vmem:[%s4106_s19 + $0x40] sm:$0xff] }
 0x26b   : > { %v1337_v5 = vmul.f32 1.442695, %v1334_v4 }
 0x26d   : > { %3798 = vpow2.f32 %v1337_v5 }
 0x270   : > { %v1755_v56 = vpop.permute.xlu2 %1754 }
 0x271   : > { %v1756_v58 = vrot.slane %v1755_v56, 4 }
 0x273   : > { %v3799_v6 = vpop.eup %3798 }
 0x274   : > { %v1342_v7 = vsel %vm1326_vm1, %v3799_v6, 0.0 }
 0x275   : > { %1343 = vadd.xlane.f32.xlu1 %v1342_v7 }
 0x278   : > { %v1783_v5 = vpop.permute.xlu2 %1782 }
 0x28e   : > { %1500 = vrot.lane.b32.xlu1 %v1499_v10, %s3882_s29 }
 0x2a7   : > { %v1463_v20 = vpop.xlane.xlu1 %1462 }
 0x2a8   : > { %3800 = vrcp.f32 %v1463_v20 }
 0x2ae   : > { %v3801_v16 = vpop.eup %3800 }
 0x2af   : > { %v1469_v17 = vmul.f32 %v3801_v16, %v3793_v54  ;;  %v1202_v54 = vpop.f32.mrf.mxu3 }
 0x2b0   : > { %v4274_v57 = vpack.c.bf16 %v1202_v54, %v1188_v19 }
 0x2b1   : > { %v1471_v18 = vpack.c.bf16 %v1469_v17, %v1469_v17 }
 0x2b2   : > { %v2001_v33 = vsel %vm1354_vm2, %v4274_v57, 0 }
 0x2b3   : > { %3399 = vmatmul.msk.bf16.vlgmr.msra.gmra.mxu2 %vm1326_vm1, %v1471_v18 }
 0x2b8   : > { %v1466_v39 = vpop.xlane.xlu0 %1465 }
 0x2bf   : > { %v1367_v21 = vpop.f32.mrf.mxu2 }
 0x2c3   : > { %3435 = vmatmul.msk.bf16.vlgmr.msrb.gmra.mxu2 %vm833_vm0, %v1604_v22 }
 0x2c7   : > { %v1369_v24 = vpop.f32.mrf.mxu2 }
 0x2c8   : > { %v2061_v24 = vunpack.c.l.b16 %v4252_v32 }
 0x2ca   : > { %v2062_v27 = vpack.c.b16 %v2061_v24, %v2061_v24 }
 0x2cb   : > { %v1758_v41 = vpop.permute.xlu0 %1757 }
 0x2cc   : > { %v1759_v45 = vrot.slane %v1758_v41, 4  ;;  %v3727_v41 = vld [vmem:[%s4106_s19 + $0x48] sm:$0xff] }
 0x2ce   : > { %v1764_v48 = vsel %vm833_vm0, %v1759_v45, 0 }
 0x2e8   : > { %v1344_v34 = vpop.xlane.xlu1 %1343 }
 0x2e9   : > { %3802 = vrcp.f32 %v1344_v34 }
 0x2ea   : > { %3804 = vrcp.f32 %v1466_v39  ;;  %v3729_v39 = vld [vmem:[%s4106_s19 + $0x58] sm:$0xff] }
 0x2eb   : > { %1742 = vmatpush.bf16.msra.mxu2 %v3729_v39 }
 0x2ef   : > { %v3803_v36 = vpop.eup %3802 }
 0x2f0   : > { %v1348_v37 = vmul.f32 %v3803_v36, %v3799_v6  ;;  %v3805_v23 = vpop.eup %3804  ;;  %v1784_v6 = vrot.slane %v1783_v5, 4 }
 0x2f1   : > { %v1470_v43 = vmul.f32 %v3805_v23, %v3797_v1  ;;  %v3728_v23 = vld [vmem:[%s4106_s19 + $0x50] sm:$0xff] }
 0x2f2   : > { %v1350_v38 = vpack.c.bf16 %v1348_v37, %v1348_v37  ;;  %v1789_v9 = vsel %vm833_vm0, %v1784_v6, 0  ;;  %1743 = vmatpush.bf16.msra.mxu2 %v3728_v23  ;;  %v4319_v6 = vpack.c.bf16 %v4264_v29, %v4245_v13 }
 0x2f3   : > { %v1472_v47 = vpack.c.bf16 %v1470_v43, %v1470_v43  ;;  %v1780_v43 = vpop.permute.xlu2 %1779 }
 0x2f4   : > { %3396 = vmatmul.msk.bf16.vlgmr.msrb.gmra.mxu3 %vm1326_vm1, %v1350_v38  ;;  %v2095_v39 = vunpack.c.l.b16 %v4319_v6 }
 0x2f6   : > { %1744 = vmatpush.bf16.msra.mxu2 %v3727_v41  ;;  %v2096_v23 = vpack.c.b16 %v2095_v39, %v2095_v39 }
 0x2fa   : > { %1745 = vmatpush.bf16.msra.mxu2 %v3726_v42  ;;  %v4345_v42 = vpack.c.bf16 %v4268_v51, %v4247_v14 }
 0x300   : > { %v1501_v31 = vpop.permute.xlu1 %1500 }
 0x301   : > { %v1506_v46 = vsel %vm1354_vm2, %v1501_v31, 0 }
 0x302   : > { %1515 = vmatpush.bf16.msra.mxu3 %v1506_v46 }
 0x305   : > { %3400 = vmatmul.msk.bf16.vlgmr.msra.gmra.mxu3 %vm1326_vm1, %v1472_v47 }
 0x306   : > { %1640 = vmatpush.bf16.xpose.msrb.mxu3 %v1631_v62 }
 0x30e   : > { %1773 = vmatpush.bf16.xpose.msra.mxu3 %v1764_v48 }
 0x315   : > { %3436 = vmatmul.msk.bf16.vlgmr.msrb.gmra.mxu3 %vm833_vm0, %v1625_v50 }
 0x316   : > { %1904 = vmatpush.bf16.msrb.mxu3 %v3733_v49 }
 0x31a   : > { %1905 = vmatpush.bf16.msrb.mxu3 %v3732_v52 }
 0x31e   : > { %1906 = vmatpush.bf16.msrb.mxu3 %v3731_v53 }
 0x322   : > { %1907 = vmatpush.bf16.msrb.mxu3 %v3730_v55 }
 0x325   : > { %3456 = vmatmul.msk.bf16.vlgmr.msra.gmra.mxu3 %vm833_vm0, %v1756_v58 }
 0x326   : > { %2010 = vmatpush.bf16.msra.mxu3 %v2001_v33 }
 0x336   : > { %v1493_v59 = vpop.f32.mrf.mxu2 }
 0x33e   : > { %v1495_v60 = vpop.f32.mrf.mxu2 }
 0x346   : > { %v1621_v61 = vpop.f32.mrf.mxu2 }
 0x347   : > { %v1622_v63 = vadd.f32 %v1621_v61, %v4142_v15 }
 0x349   : > { %v1646_v0 = vsel %vm1326_vm1, %v1622_v63, -inf }
 0x34a   : > { %1647 = vmax.xlane.f32.xlu1 %v1646_v0 }
 0x34e   : > { %v1623_v1 = vpop.f32.mrf.mxu2 }
 0x377   : > { %v1386_v2 = vpop.f32.mrf.mxu3 }
 0x378   : > { %v1390_v3 = vpack.c.bf16 %v1386_v2, %v1367_v21 }
 0x37a   : > { %3434 = vmatmul.msk.bf16.vlgmr.msrb.gmra.mxu1 %vm833_vm0, %v1390_v3  ;;  %v1781_v3 = vrot.slane %v1780_v43, 4 }
 0x37f   : > { %v1388_v4 = vpop.f32.mrf.mxu3 }
 0x388   : > { %v1517_v7 = vpop.f32.mrf.mxu3 }
 0x389   : > { %v1521_v8 = vpack.c.bf16 %v1517_v7, %v1493_v59 }
 0x38b   : > { %3417 = vmatmul.msk.bf16.vlgmr.msrb.gmra.mxu0 %vm833_vm0, %v1521_v8 }
 0x38c   : > { %1798 = vmatpush.bf16.xpose.msrb.mxu0 %v1789_v9 }
 0x390   : > { %v1519_v10 = vpop.f32.mrf.mxu3 }
 0x398   : > { %v1642_v20 = vpop.f32.mrf.mxu3 }
 0x399   : > { %v1643_v16 = vadd.f32 %v1642_v20, %v4215_v35  ;;  %v1939_v20 = vsel %vm833_vm0, %v4319_v6, 0 }
 0x39b   : > { %v1649_v17 = vsel %vm1326_vm1, %v1643_v16, -inf }
 0x39c   : > { %1650 = vmax.xlane.f32.xlu2 %v1649_v17 }
 0x3a0   : > { %v1644_v18 = vpop.f32.mrf.mxu3 }
 0x3a1   : > { %v899_v18 = vmul.f32 0.125, %v4240_v11 }
 0x3a8   : > { %v1775_v19 = vpop.f32.mrf.mxu3 }
 0x3a9   : > { %v1776_v21 = vadd.f32 %v1775_v19, %v4142_v15  ;;  %v900_v19 = vmul.f32 0.125, %v4255_v40 }
 0x3ab   : > { %v1804_v22 = vsel %vm1326_vm1, %v1776_v21, -inf  ;;  %v4327_v13 = vpack.c.bf16 %v900_v19, %v899_v18 }
 0x3ac   : > { %1805 = vmax.xlane.f32.xlu1 %v1804_v22 }
 0x3b0   : > { %v1777_v26 = vpop.f32.mrf.mxu3 }
 0x3b4   : > { %2063 = vrot.lane.b32.xlu2 %v2062_v27, %s3882_s29 }
 0x3bc   : > { %1850 = vrot.lane.b32.xlu2 %v4152_v30, %s3882_s29 }
 0x3bd   : > { %v1648_v28 = vpop.xlane.xlu1 %1647 }
 0x3be   : > { %v1652_v34 = vsub.f32 %v1622_v63, %v1648_v28  ;;  %v4308_v63 = vpack.c.bf16 %v4258_v44, %v4243_v12 }
 0x3c0   : > { %v1654_v36 = vmul.f32 1.442695, %v1652_v34  ;;  %v1920_v2 = vsel %vm833_vm0, %v4308_v63, 0 }
 0x3c2   : > { %3806 = vpow2.f32 %v1654_v36  ;;  %v2066_v36 = vunpack.c.l.b16 %v4308_v63 }
 0x3c8   : > { %v3807_v37 = vpop.eup %3806 }
 0x3c9   : > { %v1658_v38 = vsel %vm1326_vm1, %v3807_v37, 0.0 }
 0x3ca   : > { %1659 = vadd.xlane.f32.xlu0 %v1658_v38  ;;  %v2067_v38 = vpack.c.b16 %v2066_v36, %v2066_v36 }
 0x3f7   : > { %v1599_v31 = vpop.f32.mrf.mxu1 }
 0x3ff   : > { %v4341_v41 = vpop.f32.mrf.mxu1 }
 0x408   : > { %v1558_v45 = vpop.f32.mrf.mxu0 }
 0x409   : > { %v4297_v30 = vadd.f32 %v1599_v31, %v1558_v45  ;;  %v1982_v45 = vsel %vm1354_vm2, %v4345_v42, 0 }
 0x40f   : > { %v1651_v46 = vpop.xlane.xlu2 %1650 }
 0x410   : > { %v1653_v62 = vsub.f32 %v1643_v16, %v1651_v46  ;;  %v4331_v29 = vpop.f32.mrf.mxu0 }
 0x412   : > { %v1656_v47 = vmul.f32 1.442695, %v1653_v62 }
 0x414   : > { %3808 = vpow2.f32 %v1656_v47 }
 0x417   : > { %v4299_v48 = vpop.permute.xlu2 %2063 }
 0x41a   : > { %v3809_v49 = vpop.eup %3808 }
 0x41b   : > { %v1661_v50 = vsel %vm1326_vm1, %v3809_v49, 0.0 }
 0x41c   : > { %1662 = vadd.xlane.f32.xlu0 %v1661_v50 }
 0x41f   : > { %v1806_v52 = vpop.xlane.xlu1 %1805  ;;  %v1851_v53 = vpop.permute.xlu2 %1850 }
 0x420   : > { %v1810_v54 = vsub.f32 %v1776_v21, %v1806_v52  ;;  %v1852_v55 = vrot.slane %v1851_v53, 4 }
 0x422   : > { %v1812_v56 = vmul.f32 1.442695, %v1810_v54  ;;  %v1857_v58 = vsel %vm1354_vm2, %v1852_v55, 0 }
 0x423   : > { %1866 = vmatpush.bf16.msrb.mxu2 %v1857_v58 }
 0x424   : > { %3810 = vpow2.f32 %v1812_v56 }
 0x42a   : > { %v3811_v33 = vpop.eup %3810 }
 0x42b   : > { %v1816_v59 = vsel %vm1326_vm1, %v3811_v33, 0.0 }
 0x42c   : > { %1817 = vadd.xlane.f32.xlu1 %v1816_v59 }
 0x430   : > { %1828 = vrot.lane.b32.xlu0 %v4149_v25, %s3882_s29 }
 0x43d   : > { %v1660_v60 = vpop.xlane.xlu0 %1659 }
 0x43e   : > { %3812 = vrcp.f32 %v1660_v60  ;;  %v3741_v60 = vld [vmem:[%s4106_s19 + $0xb8] sm:$0xff] }
 0x444   : > { %v3813_v61 = vpop.eup %3812 }
 0x445   : > { %v1666_v0 = vmul.f32 %v3813_v61, %v3807_v37 }
 0x447   : > { %v1668_v1 = vpack.c.bf16 %v1666_v0, %v1666_v0 }
 0x449   : > { %3437 = vmatmul.msk.bf16.vlgmr.msra.gmra.mxu0 %vm1326_vm1, %v1668_v1 }
 0x44a   : > { %1929 = vmatpush.bf16.xpose.msra.mxu0 %v1920_v2  ;;  %v3740_v2 = vld [vmem:[%s4106_s19 + $0xb0] sm:$0xff] }
 0x459   : > { %3457 = vmatmul.msk.bf16.vlgmr.msrb.gmra.mxu0 %vm833_vm0, %v1781_v3 }
 0x469   : > { %3477 = vmatmul.msk.bf16.vlgmr.msra.gmra.mxu0 %vm833_vm0, %v4252_v32 }
 0x48f   : > { %v1663_v25 = vpop.xlane.xlu0 %1662 }
 0x490   : > { %3814 = vrcp.f32 %v1663_v25  ;;  %v3739_v25 = vld [vmem:[%s4106_s19 + $0xa8] sm:$0xff] }
 0x496   : > { %v3815_v4 = vpop.eup %3814 }
 0x497   : > { %v1667_v5 = vmul.f32 %v3815_v4, %v3809_v49  ;;  %v2090_v4 = vunpack.c.l.b16 %v4327_v13 }
 0x499   : > { %v1669_v12 = vpack.c.bf16 %v1667_v5, %v1667_v5  ;;  %v3738_v5 = vld [vmem:[%s4106_s19 + $0xa0] sm:$0xff] }
 0x49b   : > { %3438 = vmatmul.msk.bf16.vlgmr.msra.gmra.mxu1 %vm1326_vm1, %v1669_v12  ;;  %v2320_v12 = vrot.slane %v4274_v57, 4 }
 0x49f   : > { %v1818_v44 = vpop.xlane.xlu1 %1817 }
 0x4a0   : > { %3816 = vrcp.f32 %v1818_v44  ;;  %v2091_v44 = vpack.c.b16 %v2090_v4, %v2090_v4 }
 0x4a2   : > { %v1829_v7 = vpop.permute.xlu0 %1828 }
 0x4a3   : > { %v1830_v8 = vrot.slane %v1829_v7, 4  ;;  %v2325_v7 = vsel %vm1354_vm2, %v2320_v12, 0 }
 0x4a5   : > { %v1835_v9 = vsel %vm1354_vm2, %v1830_v8, 0 }
 0x4a6   : > { %v3817_v10 = vpop.eup %3816  ;;  %1844 = vmatpush.bf16.msrb.mxu1 %v1835_v9 }
 0x4a7   : > { %v1824_v16 = vmul.f32 %v3817_v10, %v3811_v33 }
 0x4a9   : > { %v1826_v17 = vpack.c.bf16 %v1824_v16, %v1824_v16 }
 0x4aa   : > { %1948 = vmatpush.bf16.xpose.msra.mxu1 %v1939_v20 }
 0x4ab   : > { %3458 = vmatmul.msk.bf16.vlgmr.msrb.gmra.mxu1 %vm1326_vm1, %v1826_v17 }
 0x4bb   : > { %3478 = vmatmul.msk.bf16.vlgmr.msra.gmra.mxu1 %vm833_vm0, %v4327_v13 }
 0x4c6   : > { %v1686_v21 = vpop.f32.mrf.mxu0 }
 0x4ce   : > { %v1688_v22 = vpop.f32.mrf.mxu0 }
 0x4d6   : > { %v1800_v24 = vpop.f32.mrf.mxu0 }
 0x4d7   : > { %v1801_v26 = vadd.f32 %v1800_v24, %v4215_v35 }
 0x4d9   : > { %v1807_v27 = vsel %vm1326_vm1, %v1801_v26, -inf }
 0x4da   : > { %1808 = vmax.xlane.f32.xlu1 %v1807_v27 }
 0x4de   : > { %v1802_v28 = vpop.f32.mrf.mxu0 }
 0x4e6   : > { %v1931_v34 = vpop.f32.mrf.mxu0 }
 0x4e7   : > { %v1932_v11 = vadd.f32 %v1931_v34, %v4142_v15 }
 0x4e9   : > { %v1954_v40 = vsel %vm1326_vm1, %v1932_v11, -inf }
 0x4ea   : > { %1955 = vmax.xlane.f32.xlu0 %v1954_v40 }
 0x4ee   : > { %v1933_v37 = vpop.f32.mrf.mxu0 }
 0x4f3   : > { %2068 = vrot.lane.b32.xlu1 %v2067_v38, %s3882_s29 }
 0x4fe   : > { %2097 = vrot.lane.b32.xlu0 %v2096_v23, %s3882_s29 }
 0x518   : > { %v1706_v43 = vpop.f32.mrf.mxu1 }
 0x519   : > { %v1710_v31 = vpack.c.bf16 %v1706_v43, %v1686_v21  ;;  %v2234_v43 = vrot.slane %v4252_v32, 4 }
 0x51b   : > { %3455 = vmatmul.msk.bf16.vlgmr.msra.gmra.mxu2 %vm833_vm0, %v1710_v31  ;;  %v2143_v31 = vunpack.c.l.b16 %v4345_v42 }
 0x51c   : > { %1991 = vmatpush.bf16.msra.mxu2 %v1982_v45 }
 0x51d   : > { %v2144_v45 = vpack.c.b16 %v2143_v31, %v2143_v31 }
 0x520   : > { %v1708_v46 = vpop.f32.mrf.mxu1 }
 0x528   : > { %v4350_v62 = vpop.f32.mrf.mxu1 }
 0x530   : > { %v1848_v47 = vpop.f32.mrf.mxu1 }
 0x538   : > { %v1950_v49 = vpop.f32.mrf.mxu1 }
 0x539   : > { %v1951_v50 = vadd.f32 %v1950_v49, %v4215_v35 }
 0x53b   : > { %v1957_v52 = vsel %vm1326_vm1, %v1951_v50, -inf }
 0x53c   : > { %1958 = vmax.xlane.f32.xlu0 %v1957_v52 }
 0x540   : > { %v1952_v14 = vpop.f32.mrf.mxu1 }
 0x54d   : > { %v1809_v51 = vpop.xlane.xlu1 %1808 }
 0x54e   : > { %v1811_v53 = vsub.f32 %v1801_v26, %v1809_v51 }
 0x550   : > { %v1814_v54 = vmul.f32 1.442695, %v1811_v53 }
 0x552   : > { %3818 = vpow2.f32 %v1814_v54 }
 0x558   : > { %v3819_v55 = vpop.eup %3818 }
 0x559   : > { %v1819_v56 = vsel %vm1326_vm1, %v3819_v55, 0.0 }
 0x55a   : > { %1820 = vadd.xlane.f32.xlu1 %v1819_v56 }
 0x55d   : > { %v1956_v58 = vpop.xlane.xlu0 %1955 }
 0x55e   : > { %v1960_v33 = vsub.f32 %v1932_v11, %v1956_v58 }
 0x560   : > { %v1962_v59 = vmul.f32 1.442695, %v1960_v33 }
 0x562   : > { %3820 = vpow2.f32 %v1962_v59 }
 0x565   : > { %v2069_v61 = vpop.permute.xlu1 %2068 }
 0x566   : > { %v2074_v0 = vsel %vm833_vm0, %v2069_v61, 0 }
 0x567   : > { %2083 = vmatpush.bf16.xpose.msrb.mxu1 %v2074_v0 }
 0x568   : > { %v3821_v1 = vpop.eup %3820 }
 0x569   : > { %v1966_v3 = vsel %vm1326_vm1, %v3821_v1, 0.0 }
 0x56a   : > { %1967 = vadd.xlane.f32.xlu2 %v1966_v3 }
 0x56e   : > { %3498 = vmatmul.msk.bf16.vlgmr.msrb.gmra.mxu1 %vm833_vm0, %v4299_v48 }
 0x56f   : > { %2222 = vmatpush.bf16.msra.mxu1 %v3741_v60  ;;  %v2256_v60 = vrot.slane %v4319_v6, 4 }
 0x570   : > { %v2098_v48 = vpop.permute.xlu0 %2097 }
 0x571   : > { %v2103_v18 = vsel %vm833_vm0, %v2098_v48, 0 }
 0x573   : > { %2223 = vmatpush.bf16.msra.mxu1 %v3740_v2  ;;  %2092 = vrot.lane.b32.xlu1 %v2091_v44, %s3882_s29 }
 0x577   : > { %2224 = vmatpush.bf16.msra.mxu1 %v3739_v25 }
 0x57b   : > { %2225 = vmatpush.bf16.msra.mxu1 %v3738_v5 }
 0x57f   : > { %2334 = vmatpush.bf16.msrb.mxu1 %v2325_v7 }
 0x59e   : > { %v1747_v8 = vpop.f32.mrf.mxu2 }
 0x59f   : > { %v4368_v9 = vadd.f32 %v1747_v8, %v4297_v30  ;;  %v2235_v30 = vrot.slane %v4308_v63, 4  ;;  %v3737_v8 = vld [vmem:[%s4106_s19 + $0x98] sm:$0xff] }
 0x5a0   : > { %2048 = vmatpush.bf16.msrb.mxu0 %v3737_v8 }
 0x5a1   : > { %v2240_v34 = vsel %vm833_vm0, %v2235_v30, 0 }
 0x5a6   : > { %v4383_v46 = vpop.f32.mrf.mxu2 }
 0x5af   : > { %v1959_v21 = vpop.xlane.xlu0 %1958 }
 0x5b0   : > { %v1961_v24 = vsub.f32 %v1951_v50, %v1959_v21 }
 0x5b2   : > { %v1964_v28 = vmul.f32 1.442695, %v1961_v24 }
 0x5cd   : > { %v1821_v10 = vpop.xlane.xlu1 %1820 }
 0x5ce   : > { %3822 = vrcp.f32 %v1821_v10  ;;  %v3736_v10 = vld [vmem:[%s4106_s19 + $0x90] sm:$0xff] }
 0x5cf   : > { %2049 = vmatpush.bf16.msrb.mxu0 %v3736_v10 }
 0x5d4   : > { %v3823_v20 = vpop.eup %3822 }
 0x5d5   : > { %v1825_v16 = vmul.f32 %v3823_v20, %v3819_v55  ;;  %v3735_v20 = vld [vmem:[%s4106_s19 + $0x88] sm:$0xff] }
 0x5d6   : > { %2050 = vmatpush.bf16.msrb.mxu0 %v3735_v20 }
 0x5d7   : > { %v1827_v17 = vpack.c.bf16 %v1825_v16, %v1825_v16  ;;  %v3734_v16 = vld [vmem:[%s4106_s19 + $0x80] sm:$0xff] }
 0x5d9   : > { %3459 = vmatmul.msk.bf16.vlgmr.msrb.gmra.mxu2 %vm1326_vm1, %v1827_v17 }
 0x5da   : > { %2112 = vmatpush.bf16.xpose.msrb.mxu2 %v2103_v18  ;;  %2051 = vmatpush.bf16.msrb.mxu0 %v3734_v16 }
 0x5dd   : > { %v1968_v19 = vpop.xlane.xlu2 %1967 }
 0x5de   : > { %3824 = vrcp.f32 %v1968_v19 }
 0x5df   : > { %3826 = vpow2.f32 %v1964_v28 }
 0x5e4   : > { %v3825_v22 = vpop.eup %3824 }
 0x5e5   : > { %v1974_v26 = vmul.f32 %v3825_v22, %v3821_v1  ;;  %v3827_v37 = vpop.eup %3826  ;;  %v2093_v23 = vpop.permute.xlu1 %2092  ;;  %v2261_v1 = vsel %vm833_vm0, %v2256_v60, 0 }
 0x5e6   : > { %v1969_v39 = vsel %vm1326_vm1, %v3827_v37, 0.0 }
 0x5e7   : > { %v1976_v27 = vpack.c.bf16 %v1974_v26, %v1974_v26 }
 0x5e9   : > { %3479 = vmatmul.msk.bf16.vlgmr.msra.gmra.mxu2 %vm1326_vm1, %v1976_v27 }
 0x5ea   : > { %2249 = vmatpush.bf16.xpose.msra.mxu2 %v2240_v34 }
 0x5eb   : > { %v2085_v11 = vpop.f32.mrf.mxu1 }
 0x5ec   : > { %v2086_v40 = vadd.f32 %v2085_v11, %v4142_v15  ;;  %v2255_v11 = vrot.slane %v4327_v13, 4 }
 0x5ee   : > { %v2118_v36 = vsel %vm1326_vm1, %v2086_v40, -inf }
 0x5ef   : > { %2119 = vmax.xlane.f32.xlu2 %v2118_v36 }
 0x5f3   : > { %v2087_v38 = vpop.f32.mrf.mxu1 }
 0x5f7   : > { %1970 = vadd.xlane.f32.xlu2 %v1969_v39 }
 0x5f9   : > { %3499 = vmatmul.msk.bf16.vlgmr.msrb.gmra.mxu2 %vm833_vm0, %v2093_v23 }
 0x609   : > { %3519 = vmatmul.msk.bf16.vlgmr.msra.gmra.mxu2 %vm833_vm0, %v2234_v43  ;;  %v2167_v43 = vunpack.c.l.b16 %v4274_v57 }
 0x60f   : > { %2145 = vrot.lane.b32.xlu2 %v2144_v45, %s3882_s29 }
 0x65c   : > { %v1868_v47 = vpop.f32.mrf.mxu2 }
 0x65d   : > { %v1872_v49 = vpack.c.bf16 %v1868_v47, %v4350_v62 }
 0x65f   : > { %3476 = vmatmul.msk.bf16.vlgmr.msrb.gmra.mxu3 %vm833_vm0, %v1872_v49 }
 0x662   : > { %v2120_v50 = vpop.xlane.xlu2 %2119 }
 0x663   : > { %v2124_v52 = vsub.f32 %v2086_v40, %v2120_v50 }
 0x664   : > { %v1870_v14 = vpop.f32.mrf.mxu2 }
 0x665   : > { %v2126_v51 = vmul.f32 1.442695, %v2124_v52 }
 0x667   : > { %3828 = vpow2.f32 %v2126_v51 }
 0x66a   : > { %v1971_v53 = vpop.xlane.xlu2 %1970 }
 0x66b   : > { %3830 = vrcp.f32 %v1971_v53 }
 0x66c   : > { %v1993_v54 = vpop.f32.mrf.mxu2 }
 0x66d   : > { %v3829_v55 = vpop.eup %3828 }
 0x66e   : > { %v2130_v56 = vsel %vm1326_vm1, %v3829_v55, 0.0 }
 0x66f   : > { %2131 = vadd.xlane.f32.xlu1 %v2130_v56 }
 0x671   : > { %v3831_v58 = vpop.eup %3830 }
 0x672   : > { %v1975_v33 = vmul.f32 %v3831_v58, %v3827_v37  ;;  %v2146_v59 = vpop.permute.xlu2 %2145 }
 0x673   : > { %v2151_v62 = vsel %vm1354_vm2, %v2146_v59, 0 }
 0x674   : > { %v1977_v61 = vpack.c.bf16 %v1975_v33, %v1975_v33  ;;  %v1995_v0 = vpop.f32.mrf.mxu2  ;;  %2160 = vmatpush.bf16.msrb.mxu3 %v2151_v62 }
 0x676   : > { %3480 = vmatmul.msk.bf16.vlgmr.msra.gmra.mxu3 %vm1326_vm1, %v1977_v61 }
 0x678   : > { %2270 = vmatpush.bf16.xpose.msra.mxu3 %v2261_v1 }
 0x67c   : > { %v2114_v2 = vpop.f32.mrf.mxu2 }
 0x67d   : > { %v2115_v3 = vadd.f32 %v2114_v2, %v4215_v35 }
 0x67f   : > { %v2121_v25 = vsel %vm1326_vm1, %v2115_v3, -inf }
 0x680   : > { %2122 = vmax.xlane.f32.xlu0 %v2121_v25 }
 0x684   : > { %v2116_v4 = vpop.f32.mrf.mxu2 }
 0x68c   : > { %v2251_v5 = vpop.f32.mrf.mxu2 }
 0x68d   : > { %v2252_v12 = vadd.f32 %v2251_v5, %v4142_v15 }
 0x68f   : > { %v2276_v44 = vsel %vm1326_vm1, %v2252_v12, -inf }
 0x690   : > { %2277 = vmax.xlane.f32.xlu2 %v2276_v44 }
 0x694   : > { %v2253_v7 = vpop.f32.mrf.mxu2 }
 0x6a8   : > { %2409 = vrot.lane.b32.xlu2 %v4327_v13, %s3882_s29  ;;  %v2168_v13 = vpack.c.b16 %v2167_v43, %v2167_v43 }
 0x6e2   : > { %v1909_v48 = vpop.f32.mrf.mxu3  ;;  %v2132_v17 = vpop.xlane.xlu1 %2131 }
 0x6e3   : > { %v1914_v18 = vadd.f32 %v1909_v48, %v4368_v9  ;;  %3832 = vrcp.f32 %v2132_v17 }
 0x6e9   : > { %v3833_v19 = vpop.eup %3832 }
 0x6ea   : > { %v2138_v21 = vmul.f32 %v3833_v19, %v3829_v55  ;;  %v4404_v24 = vpop.f32.mrf.mxu3 }
 0x6ec   : > { %v2140_v22 = vpack.c.bf16 %v2138_v21, %v2138_v21 }
 0x6ee   : > { %3500 = vmatmul.msk.bf16.vlgmr.msrb.gmra.mxu3 %vm1326_vm1, %v2140_v22 }
 0x6f3   : > { %v2123_v26 = vpop.xlane.xlu0 %2122 }
 0x6f4   : > { %v2125_v30 = vsub.f32 %v2115_v3, %v2123_v26 }
 0x6f6   : > { %v2128_v27 = vmul.f32 1.442695, %v2125_v30 }
 0x6f8   : > { %3834 = vpow2.f32 %v2128_v27 }
 0x6f9   : > { %v2012_v28 = vpop.f32.mrf.mxu3 }
 0x6fa   : > { %v2016_v34 = vpack.c.bf16 %v2012_v28, %v1993_v54 }
 0x6fc   : > { %3497 = vmatmul.msk.bf16.vlgmr.msrb.gmra.mxu0 %vm833_vm0, %v2016_v34 }
 0x6fe   : > { %v3835_v40 = vpop.eup %3834  ;;  %3520 = vmatmul.msk.bf16.vlgmr.msra.gmra.mxu3 %vm833_vm0, %v2255_v11 }
 0x6ff   : > { %v2133_v9 = vsel %vm1326_vm1, %v3835_v40, 0.0 }
 0x700   : > { %2134 = vadd.xlane.f32.xlu0 %v2133_v9 }
 0x701   : > { %v2014_v36 = vpop.f32.mrf.mxu3 }
 0x703   : > { %v2278_v37 = vpop.xlane.xlu2 %2277 }
 0x704   : > { %v2282_v38 = vsub.f32 %v2252_v12, %v2278_v37 }
 0x706   : > { %v2284_v39 = vmul.f32 1.442695, %v2282_v38 }
 0x708   : > { %3836 = vpow2.f32 %v2284_v39 }
 0x70b   : > { %v2410_v44 = vpop.permute.xlu2 %2409 }
 0x70c   : > { %v2411_v7 = vrot.slane %v2410_v44, 4  ;;  %v1602_v44 = vadd.f32 %v4341_v41, %v4331_v29 }
 0x70e   : > { %v3837_v23 = vpop.eup %3836 }
 0x70f   : > { %v2288_v31 = vsel %vm1326_vm1, %v3837_v23, 0.0 }
 0x710   : > { %2289 = vadd.xlane.f32.xlu1 %v2288_v31 }
 0x714   : > { %2169 = vrot.lane.b32.xlu0 %v2168_v13, %s3882_s29 }
 0x71c   : > { %2412 = vrot.lane.b32.xlu0 %v4319_v6, %s3882_s29  ;;  %v2300_v6 = vrot.slane %v4345_v42, 4 }
 0x71e   : > { %v2305_v56 = vsel %vm1354_vm2, %v2300_v6, 0  ;;  %v3743_v6 = vld [vmem:[%s4106_s19 + $0xc8] sm:$0xff] }
 0x724   : > { %2384 = vrot.lane.b32.xlu0 %v4252_v32, %s3882_s29 }
 0x729   : > { %2387 = vrot.lane.b32.xlu1 %v4308_v63, %s3882_s29 }
 0x771   : > { %v2162_v45 = vpop.f32.mrf.mxu3 }
 0x773   : > { %v2135_v47 = vpop.xlane.xlu0 %2134 }
 0x774   : > { %3838 = vrcp.f32 %v2135_v47 }
 0x779   : > { %v2053_v49 = vpop.f32.mrf.mxu0  ;;  %v2164_v50 = vpop.f32.mrf.mxu3 }
 0x77a   : > { %v4419_v52 = vadd.f32 %v2053_v49, %v1914_v18  ;;  %v3839_v51 = vpop.eup %3838  ;;  %v3745_v50 = vld [vmem:[%s4106_s19 + $0xd8] sm:$0xff] }
 0x77b   : > { %v2139_v55 = vmul.f32 %v3839_v51, %v3835_v40  ;;  %2372 = vmatpush.bf16.msrb.mxu2 %v3745_v50 }
 0x77d   : > { %v2141_v58 = vpack.c.bf16 %v2139_v55, %v2139_v55  ;;  %v3742_v55 = vld [vmem:[%s4106_s19 + $0xc0] sm:$0xff] }
 0x781   : > { %v2272_v14 = vpop.f32.mrf.mxu3  ;;  %v4432_v16 = vpop.f32.mrf.mxu0 }
 0x782   : > { %v2273_v53 = vadd.f32 %v2272_v14, %v4215_v35  ;;  %v3744_v14 = vld [vmem:[%s4106_s19 + $0xd0] sm:$0xff] }
 0x783   : > { %v2290_v33 = vpop.xlane.xlu1 %2289  ;;  %2373 = vmatpush.bf16.msrb.mxu2 %v3744_v14 }
 0x784   : > { %v2279_v54 = vsel %vm1326_vm1, %v2273_v53, -inf  ;;  %3840 = vrcp.f32 %v2290_v33 }
 0x785   : > { %2280 = vmax.xlane.f32.xlu0 %v2279_v54 }
 0x786   : > { %v2170_v32 = vpop.permute.xlu0 %2169 }
 0x787   : > { %v2175_v63 = vsel %vm1354_vm2, %v2170_v32, 0  ;;  %2374 = vmatpush.bf16.msrb.mxu2 %v3743_v6 }
 0x788   : > { %2184 = vmatpush.bf16.msra.mxu0 %v2175_v63 }
 0x789   : > { %v2274_v59 = vpop.f32.mrf.mxu3 }
 0x78a   : > { %v3841_v0 = vpop.eup %3840 }
 0x78b   : > { %3501 = vmatmul.msk.bf16.vlgmr.msra.gmra.mxu0 %vm1326_vm1, %v2141_v58  ;;  %v2296_v1 = vmul.f32 %v3841_v0, %v3837_v23  ;;  %2375 = vmatpush.bf16.msrb.mxu2 %v3742_v55 }
 0x78c   : > { %2314 = vmatpush.bf16.msrb.mxu0 %v2305_v56 }
 0x78d   : > { %v2298_v2 = vpack.c.bf16 %v2296_v1, %v2296_v1 }
 0x78e   : > { %v2413_v60 = vpop.permute.xlu0 %2412 }
 0x78f   : > { %v2414_v62 = vrot.slane %v2413_v60, 4 }
 0x791   : > { %v2419_v61 = vsel %vm833_vm0, %v2414_v62, 0 }
 0x792   : > { %2428 = vmatpush.bf16.xpose.msra.mxu0 %v2419_v61 }
 0x796   : > { %v2385_v5 = vpop.permute.xlu0 %2384 }
 0x797   : > { %v2386_v12 = vrot.slane %v2385_v5, 4 }
 0x79b   : > { %3521 = vmatmul.msk.bf16.vlgmr.msrb.gmra.mxu0 %vm1326_vm1, %v2298_v2  ;;  %v2388_v3 = vpop.permute.xlu1 %2387 }
 0x79c   : > { %v2389_v25 = vrot.slane %v2388_v3, 4 }
 0x79e   : > { %v2394_v4 = vsel %vm833_vm0, %v2389_v25, 0 }
 0x79f   : > { %2403 = vmatpush.bf16.xpose.msrb.mxu3 %v2394_v4 }
 0x7a6   : > { %3540 = vmatmul.msk.bf16.vlgmr.msrb.gmra.mxu3 %vm833_vm0, %v2386_v12  ;;  %v3749_v12 = vld [vmem:[%s4106_s19 + $0xf8] sm:$0xff] }
 0x7a7   : > { %2534 = vmatpush.bf16.msra.mxu3 %v3749_v12 }
 0x7ab   : > { %3541 = vmatmul.msk.bf16.vlgmr.msra.gmra.mxu0 %vm833_vm0, %v2411_v7 }
 0x7f8   : > { %v2281_v8 = vpop.xlane.xlu0 %2280 }
 0x7f9   : > { %v2283_v10 = vsub.f32 %v2273_v53, %v2281_v8  ;;  %v1753_v8 = vadd.f32 %v4383_v46, %v1602_v44 }
 0x7fb   : > { %v2286_v20 = vmul.f32 1.442695, %v2283_v10 }
 0x7fd   : > { %3842 = vpow2.f32 %v2286_v20  ;;  %v1915_v20 = vadd.f32 %v4404_v24, %v1753_v8 }
 0x803   : > { %v3843_v48 = vpop.eup %3842 }
 0x804   : > { %v2291_v17 = vsel %vm1326_vm1, %v3843_v48, 0.0 }
 0x805   : > { %2292 = vadd.xlane.f32.xlu1 %v2291_v17 }
 0x808   : > { %v2186_v18 = vpop.f32.mrf.mxu0 }
 0x809   : > { %v2190_v19 = vpack.c.bf16 %v2186_v18, %v2162_v45 }
 0x80b   : > { %3518 = vmatmul.msk.bf16.vlgmr.msra.gmra.mxu1 %vm833_vm0, %v2190_v19 }
 0x810   : > { %v2188_v21 = vpop.f32.mrf.mxu0 }
 0x811   : > { %v3748_v21 = vld [vmem:[%s4106_s19 + $0xf0] sm:$0xff] }
 0x812   : > { %2535 = vmatpush.bf16.msra.mxu3 %v3748_v21 }
 0x818   : > { %v2316_v22 = vpop.f32.mrf.mxu0 }
 0x820   : > { %v2318_v26 = vpop.f32.mrf.mxu0 }
 0x821   : > { %v3746_v26 = vld [vmem:[%s4106_s19 + $0xe0] sm:$0xff] }
 0x828   : > { %v2430_v30 = vpop.f32.mrf.mxu0 }
 0x829   : > { %v2431_v27 = vadd.f32 %v2430_v30, %v4215_v35  ;;  %v2405_v28 = vpop.f32.mrf.mxu3 }
 0x82a   : > { %v2406_v34 = vadd.f32 %v2405_v28, %v4142_v15  ;;  %v3864_v28 = vld [vmem:[%s4021_s21] sm:$0xff] }
 0x82b   : > { %v2437_v11 = vsel %vm1326_vm1, %v2431_v27, -inf }
 0x82c   : > { %2438 = vmax.xlane.f32.xlu2 %v2437_v11  ;;  %v2434_v40 = vsel %vm1326_vm1, %v2406_v34, -inf }
 0x82d   : > { %2435 = vmax.xlane.f32.xlu0 %v2434_v40 }
 0x830   : > { %v2432_v9 = vpop.f32.mrf.mxu0 }
 0x831   : > { %v2407_v36 = vpop.f32.mrf.mxu3 }
 0x832   : > { %v3865_v36 = vld [vmem:[%s4021_s21 + $0x8] sm:$0xff]  ;;  %s3668_s21 = sshll.u32 %s3985_s15, 6 }
 0x833   : > { %s4497_s26 = scalar_lea.vmem %s4614_s6, %s3668_s21 }
 0x834   : > { %v3587_v55 = vld [vmem:[%s4497_s26 + $0x30] sm:$0xf]  ;;  %v3563_v44 = vld [vmem:[%s4497_s26] sm:$0xf]  ;;  %v3750_v8 = vld [vmem:[%s4497_s26 + $0x4] sm:$0xf] }
 0x878   : > { %v2293_v37 = vpop.xlane.xlu1 %2292 }
 0x879   : > { %3844 = vrcp.f32 %v2293_v37 }
 0x87f   : > { %v3845_v38 = vpop.eup %3844 }
 0x880   : > { %v2297_v39 = vmul.f32 %v3845_v38, %v3843_v48  ;;  %v2059_v48 = vadd.f32 %v4432_v16, %v1915_v20 }
 0x882   : > { %v2299_v23 = vpack.c.bf16 %v2297_v39, %v2297_v39  ;;  %v3883_v39 = vmov 64.0  }
 0x884   : > { %3522 = vmatmul.msk.bf16.vlgmr.msrb.gmra.mxu1 %vm1326_vm1, %v2299_v23 }
 0x888   : > { %v2227_v35 = vpop.f32.mrf.mxu1 }
 0x889   : > { %v2232_v15 = vadd.f32 %v2227_v35, %v4419_v52 }
 0x890   : > { %v2229_v32 = vpop.f32.mrf.mxu1 }
 0x891   : > { %v2233_v17 = vadd.f32 %v2229_v32, %v2059_v48  ;;  %v3757_v32 = vld [vmem:[%s4497_s26 + $0x34] sm:$0xf0]  ;;  %v3565_v48 = vld [vmem:[%s4497_s26 + $0x8] sm:$0xf0] }
 0x89f   : > { %v2439_v43 = vpop.xlane.xlu2 %2438 }
 0x8a0   : > { %v2441_v31 = vsub.f32 %v2431_v27, %v2439_v43  ;;  %v2436_v13 = vpop.xlane.xlu0 %2435 }
 0x8a1   : > { %v2440_v45 = vsub.f32 %v2406_v34, %v2436_v13 }
 0x8a2   : > { %v2444_v47 = vmul.f32 1.442695, %v2441_v31 }
 0x8a3   : > { %v2442_v49 = vmul.f32 1.442695, %v2440_v45 }
 0x8a4   : > { %3846 = vpow2.f32 %v2444_v47 }
 0x8a5   : > { %3848 = vpow2.f32 %v2442_v49 }
 0x8aa   : > { %v3847_v51 = vpop.eup %3846 }
 0x8ab   : > { %v3849_v53 = vpop.eup %3848  ;;  %v2449_v54 = vsel %vm1326_vm1, %v3847_v51, 0.0 }
 0x8ac   : > { %2450 = vadd.xlane.f32.xlu1 %v2449_v54  ;;  %v2446_v52 = vsel %vm1326_vm1, %v3849_v53, 0.0 }
 0x8ad   : > { %2447 = vadd.xlane.f32.xlu0 %v2446_v52 }
 0x8c1   : > { %2458 = vrot.lane.b32.xlu0 %v4345_v42, %s3882_s29 }
 0x8c5   : > { %2480 = vrot.lane.b32.xlu1 %v4274_v57, %s3882_s29  ;;  %s729_s29 = scalar_lea.vmem %s4620_s12, %s3985_s15 }
 0x901   : > { %v2336_v63 = vpop.f32.mrf.mxu1 }
 0x902   : > { %v2340_v56 = vpack.c.bf16 %v2336_v63, %v2316_v22  ;;  %v3747_v22 = vld [vmem:[%s4106_s19 + $0xe8] sm:$0xff]  ;;  %v3756_v63 = vld [vmem:[%s4497_s26 + $0x34] sm:$0xf] }
 0x903   : > { %2536 = vmatpush.bf16.msra.mxu3 %v3747_v22 }
 0x904   : > { %3539 = vmatmul.msk.bf16.vlgmr.msrb.gmra.mxu2 %vm833_vm0, %v2340_v56  ;;  %v3588_v56 = vor.u32 %v3757_v32, %v3587_v55  ;;  %v3769_v55 = vld [vmem:[%s4520_s17 + $0x58] sm:$0xff]  ;;  %v3768_v32 = vld [vmem:[%s4520_s17 + $0x50] sm:$0xff] }
 0x906   : > { %2673 = vmatpush.bf16.msrb.mxu0 %v3588_v56  ;;  %v3767_v56 = vld [vmem:[%s4520_s17 + $0x48] sm:$0xff] }
 0x907   : > { %2537 = vmatpush.bf16.msra.mxu3 %v3746_v26  ;;  %v3764_v26 = vld [vmem:[%s4520_s17 + $0x30] sm:$0xff] }
 0x909   : > { %v2338_v58 = vpop.f32.mrf.mxu1 }
 0x90a   : > { %v3589_v58 = vld [vmem:[%s4497_s26 + $0x38] sm:$0xf0] }
 0x91f   : > { %v2451_v59 = vpop.xlane.xlu1 %2450 }
 0x920   : > { %v2448_v33 = vpop.xlane.xlu0 %2447 }
 0x921   : > { %3850 = vrcp.f32 %v2448_v33  ;;  %v3592_v33 = vor.u32 %v3756_v63, %v3589_v58  ;;  %v3759_v63 = vld [vmem:[%s4520_s17 + $0x8] sm:$0xff]  ;;  %v3758_v58 = vld [vmem:[%s4520_s17] sm:$0xff] }
 0x922   : > { %3852 = vrcp.f32 %v2451_v59  ;;  %v3579_v59 = vld [vmem:[%s4497_s26 + $0x20] sm:$0xf] }
 0x923   : > { %3854 = vrcp.f32 %v3883_v39 }
 0x927   : > { %v3851_v60 = vpop.eup %3850 }
 0x928   : > { %v2454_v61 = vmul.f32 %v3851_v60, %v3849_v53  ;;  %v3853_v0 = vpop.eup %3852  ;;  %v3755_v60 = vld [vmem:[%s4497_s26 + $0x24] sm:$0xf0] }
 0x929   : > { %v2455_v2 = vmul.f32 %v3853_v0, %v3847_v51  ;;  %v3855_v23 = vpop.eup %3854 }
 0x92a   : > { %v2456_v3 = vpack.c.bf16 %v2454_v61, %v2454_v61  ;;  %v2555_v35 = vmul.f32 64.0, %v3855_v23  ;;  %vm2559_vm3 = vweird.f32 %v3855_v23  ;;  %v3580_v61 = vor.u32 %v3755_v60, %v3579_v59  ;;  %v2620_v59 = vld [vmem:[%s712_s30] sm:$0x3] }
 0x92b   : > { %v2457_v5 = vpack.c.bf16 %v2455_v2, %v2455_v2  ;;  %v3752_v2 = vld [vmem:[%s4497_s26 + $0x14] sm:$0xf] }
 0x92c   : > { %2674 = vmatpush.bf16.msrb.mxu0 %v3580_v61  ;;  %v2622_v61 = vperm.slane %v2620_v59, 0 }
 0x933   : > { %v2459_v62 = vpop.permute.xlu0 %2458 }
 0x934   : > { %v2460_v42 = vrot.slane %v2459_v62, 4  ;;  %v3754_v62 = vld [vmem:[%s4497_s26 + $0x24] sm:$0xf] }
 0x936   : > { %v2465_v57 = vsel %vm1354_vm2, %v2460_v42, 0  ;;  %v3581_v42 = vld [vmem:[%s4497_s26 + $0x28] sm:$0xf0] }
 0x937   : > { %2474 = vmatpush.bf16.msra.mxu1 %v2465_v57  ;;  %v2481_v1 = vpop.permute.xlu1 %2480  ;;  %v3584_v0 = vor.u32 %v3754_v62, %v3581_v42  ;;  %v3571_v57 = vld [vmem:[%s4497_s26 + $0x10] sm:$0xf]  ;;  %v2623_v42 = vperm.slane %v2620_v59, 1 }
 0x938   : > { %v2482_v25 = vrot.slane %v2481_v1, 4  ;;  %v3753_v1 = vld [vmem:[%s4497_s26 + $0x14] sm:$0xf0] }
 0x93a   : > { %v2487_v4 = vsel %vm1354_vm2, %v2482_v25, 0  ;;  %3542 = vmatmul.msk.bf16.vlgmr.msra.gmra.mxu1 %vm1326_vm1, %v2456_v3  ;;  %v3572_v3 = vor.u32 %v3753_v1, %v3571_v57  ;;  %v3573_v25 = vld [vmem:[%s4497_s26 + $0x18] sm:$0xf0] }
 0x93b   : > { %2496 = vmatpush.bf16.msra.mxu2 %v2487_v4  ;;  %2687 = vmatpush.bf16.msrb.mxu1 %v3592_v33  ;;  %v3766_v33 = vld [vmem:[%s4520_s17 + $0x40] sm:$0xff] }
 0x93c   : > { %2675 = vmatpush.bf16.msrb.mxu0 %v3572_v3 }
 0x93e   : > { %3543 = vmatmul.msk.bf16.vlgmr.msra.gmra.mxu2 %vm1326_vm1, %v2457_v5  ;;  %v3576_v5 = vor.u32 %v3752_v2, %v3573_v25 }
 0x93f   : > { %2688 = vmatpush.bf16.msrb.mxu1 %v3584_v0 }
 0x943   : > { %2689 = vmatpush.bf16.msrb.mxu1 %v3576_v5 }
 0x987   : > { %v2377_v7 = vpop.f32.mrf.mxu2 }
 0x988   : > { %v2382_v10 = vadd.f32 %v2377_v7, %v2232_v15  ;;  %v2556_v15 = vsub.f32 1.0, %v2555_v35  ;;  %v3751_v7 = vld [vmem:[%s4497_s26 + $0x4] sm:$0xf0] }
 0x989   : > { %v3564_v20 = vor.u32 %v3751_v7, %v3563_v44 }
 0x98a   : > { %v2557_v43 = vmul.f32 %v3855_v23, %v2556_v15  ;;  %v3785_v15 = vld [vmem:[%s723_s27] ss:$0 sm:$0xff]  ;;  %s732_s27 = scalar_lea.vmem %s4621_s13, %s3985_s15 }
 0x98b   : > { %2676 = vmatpush.bf16.msrb.mxu0 %v3564_v20 }
 0x98c   : > { %v2558_v31 = vadd.f32 %v3855_v23, %v2557_v43 }
 0x98e   : > { %v4479_v13 = vsel %vm2559_vm3, %v3855_v23, %v2558_v31 }
 0x98f   : > { %v2379_v18 = vpop.f32.mrf.mxu2 }
 0x990   : > { %v2383_v19 = vadd.f32 %v2379_v18, %v2233_v17  ;;  %v3568_v17 = vor.u32 %v3750_v8, %v3565_v48  ;;  %v3765_v18 = vld [vmem:[%s4520_s17 + $0x38] sm:$0xff] }
 0x991   : > { %2835 = vmatpush.bf16.msrb.mxu2 %v3765_v18 }
 0x992   : > { %2690 = vmatpush.bf16.msrb.mxu1 %v3568_v17 }
 0x995   : > { %2836 = vmatpush.bf16.msrb.mxu2 %v3764_v26 }
 0x9b7   : > { %v2476_v29 = vpop.f32.mrf.mxu1 }
 0x9bf   : > { %v2478_v41 = vpop.f32.mrf.mxu1 }
 0x9c1   : > { %v2498_v46 = vpop.f32.mrf.mxu2 }
 0x9c2   : > { %v2502_v30 = vpack.c.bf16 %v2498_v46, %v2476_v29  ;;  %v3772_v29 = vld [vmem:[%s4520_s17 + $0x70] sm:$0xff] }
 0x9c4   : > { %3560 = vmatmul.msk.bf16.vlgmr.msra.gmra.mxu3 %vm833_vm0, %v2502_v30 }
 0x9c9   : > { %v2500_v24 = vpop.f32.mrf.mxu2 }
 0x9ca   : > { %v3763_v24 = vld [vmem:[%s4520_s17 + $0x28] sm:$0xff] }
 0x9cb   : > { %2837 = vmatpush.bf16.msrb.mxu2 %v3763_v24 }
 0xa47   : > { %v2539_v16 = vpop.f32.mrf.mxu3 }
 0xa48   : > { %v2544_v27 = vadd.f32 %v2539_v16, %v2382_v10  ;;  %v3771_v16 = vld [vmem:[%s4520_s17 + $0x68] sm:$0xff] }
 0xa4a   : > { %v2546_v34 = vadd.f32 %v3864_v28, %v2544_v27 }
 0xa4c   : > { %v2548_v11 = vsel %vm833_vm0, %v2546_v34, 0.0 }
 0xa4d   : > { %2549 = vadd.xlane.f32.xlu2 %v2548_v11  ;;  %v3770_v11 = vld [vmem:[%s4520_s17 + $0x60] sm:$0xff] }
 0xa4f   : > { %v2541_v40 = vpop.f32.mrf.mxu3 }
 0xa50   : > { %v2545_v9 = vadd.f32 %v2541_v40, %v2383_v19  ;;  %v3773_v19 = vld [vmem:[%s4520_s17 + $0x78] sm:$0xff] }
 0xa51   : > { %2849 = vmatpush.bf16.msrb.mxu3 %v3773_v19 }
 0xa52   : > { %v2547_v37 = vadd.f32 %v3865_v36, %v2545_v9 }
 0xa54   : > { %v2551_v38 = vsel %vm833_vm0, %v2547_v37, 0.0 }
 0xa55   : > { %2552 = vadd.xlane.f32.xlu2 %v2551_v38  ;;  %2850 = vmatpush.bf16.msrb.mxu3 %v3772_v29 }
 0xa59   : > { %2851 = vmatpush.bf16.msrb.mxu3 %v3771_v16 }
 0xa5d   : > { %2852 = vmatpush.bf16.msrb.mxu3 %v3770_v11 }
 0xa61   : > { %2853 = vmatpush.bf16.msrb.mxu3 %v3769_v55  ;;  %v3789_v55 = vld [vmem:[%s732_s27] ss:$0 sm:$0xff] }
 0xa65   : > { %2854 = vmatpush.bf16.msrb.mxu3 %v3768_v32 }
 0xa69   : > { %2855 = vmatpush.bf16.msrb.mxu3 %v3767_v56 }
 0xa6d   : > { %2856 = vmatpush.bf16.msrb.mxu3 %v3766_v33 }
 0xac0   : > { %v2550_v45 = vpop.xlane.xlu2 %2549 }
 0xac1   : > { %v2561_v47 = vmul.f32 %v4479_v13, %v2550_v45 }
 0xac3   : > { %v4482_v49 = vsub.f32 %v2546_v34, %v2561_v47  ;;  %v3762_v34 = vld [vmem:[%s4520_s17 + $0x20] sm:$0xff] }
 0xac4   : > { %2838 = vmatpush.bf16.msrb.mxu2 %v3762_v34  ;;  %v3786_v47 = vld [vmem:[%s726_s18] ss:$0 sm:$0xff] }
 0xac5   : > { %v2565_v50 = vmul.f32 %v4482_v49, %v4482_v49 }
 0xac7   : > { %v2567_v14 = vsel %vm833_vm0, %v2565_v50, 0.0 }
 0xac8   : > { %2568 = vadd.xlane.f32.xlu2 %v2567_v14  ;;  %v2553_v51 = vpop.xlane.xlu2 %2552 }
 0xac9   : > { %v2562_v53 = vmul.f32 %v4479_v13, %v2553_v51 }
 0xacb   : > { %v4488_v54 = vsub.f32 %v2547_v37, %v2562_v53 }
 0xacd   : > { %v2566_v6 = vmul.f32 %v4488_v54, %v4488_v54 }
 0xacf   : > { %v2570_v52 = vsel %vm833_vm0, %v2566_v6, 0.0 }
 0xad0   : > { %2571 = vadd.xlane.f32.xlu0 %v2570_v52  ;;  %v3761_v52 = vld [vmem:[%s4520_s17 + $0x18] sm:$0xff] }
 0xad1   : > { %2839 = vmatpush.bf16.msrb.mxu2 %v3761_v52 }
 0xb3b   : > { %v2569_v4 = vpop.xlane.xlu2 %2568 }
 0xb3c   : > { %v2573_v12 = vmul.f32 %v2569_v4, %v4479_v13 }
 0xb3e   : > { %v2575_v10 = vadd.f32 1e-05, %v2573_v12 }
 0xb40   : > { %3856 = vrsqrt.f32 %v2575_v10  ;;  %vm2583_vm5 = vweird.f32 %v2575_v10 }
 0xb43   : > { %v2572_v21 = vpop.xlane.xlu0 %2571 }
 0xb44   : > { %v2574_v22 = vmul.f32 %v2572_v21, %v4479_v13 }
 0xb46   : > { %v3857_v41 = vpop.eup %3856  ;;  %v2576_v46 = vadd.f32 1e-05, %v2574_v22 }
 0xb47   : > { %v2578_v30 = vmul.f32 %v3857_v41, %v2575_v10  ;;  %vm2584_vm4 = vweird.f32 %v3857_v41  ;;  %v3787_v10 = vld [vmem:[%s720_s22] ss:$0 sm:$0xff] }
 0xb48   : > { %3858 = vrsqrt.f32 %v2576_v46  ;;  %vm2585_vm6 = vmor %vm2583_vm5, %vm2584_vm4  ;;  %vm2593_vm8 = vweird.f32 %v2576_v46 }
 0xb49   : > { %v2579_v27 = vmul.f32 %v3857_v41, %v2578_v30 }
 0xb4b   : > { %v2580_v28 = vmul.f32 0.5, %v2579_v27 }
 0xb4d   : > { %v2581_v40 = vsub.f32 1.5, %v2580_v28 }
 0xb4e   : > { %v3859_v9 = vpop.eup %3858 }
 0xb4f   : > { %v2582_v36 = vmul.f32 %v3857_v41, %v2581_v40  ;;  %v2588_v37 = vmul.f32 %v3859_v9, %v2576_v46  ;;  %vm2594_vm7 = vweird.f32 %v3859_v9 }
 0xb50   : > { %vm2595_vm9 = vmor %vm2593_vm8, %vm2594_vm7 }
 0xb51   : > { %v2589_v38 = vmul.f32 %v3859_v9, %v2588_v37  ;;  %v2586_v39 = vsel %vm2585_vm6, %v3857_v41, %v2582_v36 }
 0xb52   : > { %v2597_v43 = vmul.f32 %v2586_v39, %v4482_v49 }
 0xb53   : > { %v2590_v23 = vmul.f32 0.5, %v2589_v38 }
 0xb54   : > { %v2603_v50 = vmul.f32 %v3785_v15, %v2597_v43 }
 0xb55   : > { %v2591_v35 = vsub.f32 1.5, %v2590_v23 }
 0xb56   : > { %v2609_v53 = vadd.f32 %v3786_v47, %v2603_v50 }
 0xb57   : > { %v2592_v31 = vmul.f32 %v3859_v9, %v2591_v35 }
 0xb59   : > { %v2596_v45 = vsel %vm2595_vm9, %v3859_v9, %v2592_v31 }
 0xb5a   : > { %v2598_v14 = vmul.f32 %v2596_v45, %v4488_v54  ;;  %v3760_v54 = vld [vmem:[%s4520_s17 + $0x10] sm:$0xff] }
 0xb5b   : > { %2840 = vmatpush.bf16.msrb.mxu2 %v3760_v54 }
 0xb5c   : > { %v2604_v51 = vmul.f32 %v3785_v15, %v2598_v14 }
 0xb5e   : > { %v2610_v49 = vadd.f32 %v3786_v47, %v2604_v51 }
 0xb5f   : > { %2841 = vmatpush.bf16.msrb.mxu2 %v3759_v63 }
 0xb60   : > { %v2611_v6 = vpack.c.bf16 %v2610_v49, %v2609_v53 }
 0xb62   : > { %3593 = vmatmul.msk.bf16.vlgmr.msrb.gmra.mxu0 %vm833_vm0, %v2611_v6  ;;  %3594 = vmatmul.msk.bf16.vlgmr.msrb.gmra.mxu1 %vm833_vm0, %v2611_v6  ;;  %v3788_v6 = vld [vmem:[%s729_s29] ss:$0 sm:$0xff] }
 0xb63   : > { %2842 = vmatpush.bf16.msrb.mxu2 %v3758_v58 }
 0xbdf   : > { %v2678_v60 = vpop.f32.mrf.mxu0  ;;  %v2692_v62 = vpop.f32.mrf.mxu1 }
 0xbe0   : > { %v2679_v0 = vadd.f32 %v2678_v60, %v2622_v61  ;;  %v2693_v57 = vadd.f32 %v2692_v62, %v2623_v42 }
 0xbe2   : > { %v2697_v4 = vmax.f32 %v2679_v0, 0.0  ;;  %v2698_v5 = vmax.f32 %v2693_v57, 0.0 }
 0xbe7   : > { %v2680_v1 = vpop.f32.mrf.mxu0  ;;  %v2694_v2 = vpop.f32.mrf.mxu1 }
 0xbe8   : > { %v2681_v3 = vadd.f32 %v2680_v1, %v2622_v61  ;;  %v2695_v25 = vadd.f32 %v2694_v2, %v2623_v42 }
 0xbea   : > { %v2699_v12 = vmax.f32 %v2681_v3, 0.0  ;;  %v2700_v44 = vmax.f32 %v2695_v25, 0.0 }
 0xbec   : > { %v2701_v7 = vpack.c.bf16 %v2699_v12, %v2697_v4  ;;  %v2702_v8 = vpack.c.bf16 %v2700_v44, %v2698_v5 }
 0xbee   : > { %2843 = vmatmul.bf16.vlgmr.msrb.gmra.mxu2 %v2701_v7  ;;  %2857 = vmatmul.bf16.vlgmr.msrb.gmra.mxu3 %v2702_v8 }
 0xc71   : > { %v2844_v20 = vpop.f32.mrf.mxu2  ;;  %v2858_v48 = vpop.f32.mrf.mxu3 }
 0xc72   : > { %v2845_v17 = vadd.f32 %v3787_v10, %v2844_v20 }
 0xc74   : > { %v2859_v18 = vadd.f32 %v2858_v48, %v2845_v17 }
 0xc76   : > { %v2863_v19 = vadd.f32 %v2859_v18, %v2609_v53 }
 0xc78   : > { %v2865_v21 = vsel %vm833_vm0, %v2863_v19, 0.0 }
 0xc79   : > { %v2846_v22 = vpop.f32.mrf.mxu2  ;;  %2866 = vadd.xlane.f32.xlu1 %v2865_v21  ;;  %v2860_v29 = vpop.f32.mrf.mxu3 }
 0xc7a   : > { %v2847_v26 = vadd.f32 %v3787_v10, %v2846_v22 }
 0xc7c   : > { %v2861_v41 = vadd.f32 %v2860_v29, %v2847_v26 }
 0xc7e   : > { %v2864_v46 = vadd.f32 %v2861_v41, %v2610_v49 }
 0xc80   : > { %v2868_v30 = vsel %vm833_vm0, %v2864_v46, 0.0 }
 0xc81   : > { %2869 = vadd.xlane.f32.xlu2 %v2868_v30 }
 0xcec   : > { %v2867_v24 = vpop.xlane.xlu1 %2866 }
 0xced   : > { %v2871_v16 = vmul.f32 %v2867_v24, %v4479_v13 }
 0xcef   : > { %v2873_v27 = vsub.f32 %v2863_v19, %v2871_v16 }
 0xcf1   : > { %v2875_v28 = vmul.f32 %v2873_v27, %v2873_v27 }
 0xcf3   : > { %v2877_v34 = vsel %vm833_vm0, %v2875_v28, 0.0 }
 0xcf4   : > { %v2870_v11 = vpop.xlane.xlu2 %2869  ;;  %2878 = vadd.xlane.f32.xlu2 %v2877_v34 }
 0xcf5   : > { %v2872_v40 = vmul.f32 %v2870_v11, %v4479_v13 }
 0xcf7   : > { %v2874_v9 = vsub.f32 %v2864_v46, %v2872_v40 }
 0xcf9   : > { %v2876_v36 = vmul.f32 %v2874_v9, %v2874_v9 }
 0xcfb   : > { %v2880_v37 = vsel %vm833_vm0, %v2876_v36, 0.0 }
 0xcfc   : > { %2881 = vadd.xlane.f32.xlu2 %v2880_v37 }
 0xd67   : > { %v2879_v38 = vpop.xlane.xlu2 %2878 }
 0xd68   : > { %v2883_v39 = vmul.f32 %v2879_v38, %v4479_v13 }
 0xd6a   : > { %v2885_v23 = vadd.f32 1e-05, %v2883_v39 }
 0xd6c   : > { %3860 = vrsqrt.f32 %v2885_v23  ;;  %vm2893_vm11 = vweird.f32 %v2885_v23 }
 0xd6f   : > { %v2882_v35 = vpop.xlane.xlu2 %2881 }
 0xd70   : > { %v2884_v15 = vmul.f32 %v2882_v35, %v4479_v13 }
 0xd72   : > { %v3861_v43 = vpop.eup %3860  ;;  %v2886_v31 = vadd.f32 1e-05, %v2884_v15 }
 0xd73   : > { %v2888_v45 = vmul.f32 %v3861_v43, %v2885_v23  ;;  %vm2894_vm10 = vweird.f32 %v3861_v43 }
 0xd74   : > { %3862 = vrsqrt.f32 %v2886_v31  ;;  %vm2895_vm12 = vmor %vm2893_vm11, %vm2894_vm10  ;;  %vm2903_vm14 = vweird.f32 %v2886_v31 }
 0xd75   : > { %v2889_v47 = vmul.f32 %v3861_v43, %v2888_v45 }
 0xd77   : > { %v2890_v50 = vmul.f32 0.5, %v2889_v47 }
 0xd79   : > { %v2891_v14 = vsub.f32 1.5, %v2890_v50 }
 0xd7a   : > { %v3863_v51 = vpop.eup %3862 }
 0xd7b   : > { %v2892_v53 = vmul.f32 %v3861_v43, %v2891_v14  ;;  %v2898_v49 = vmul.f32 %v3863_v51, %v2886_v31  ;;  %vm2904_vm13 = vweird.f32 %v3863_v51 }
 0xd7c   : > { %vm2905_vm15 = vmor %vm2903_vm14, %vm2904_vm13 }
 0xd7d   : > { %v2896_v13 = vsel %vm2895_vm12, %v3861_v43, %v2892_v53  ;;  %v2899_v52 = vmul.f32 %v3863_v51, %v2898_v49 }
 0xd7e   : > { %v2907_v54 = vmul.f32 %v2896_v13, %v2873_v27 }
 0xd7f   : > { %v2900_v32 = vmul.f32 0.5, %v2899_v52 }
 0xd80   : > { %v2913_v63 = vmul.f32 %v3788_v6, %v2907_v54 }
 0xd81   : > { %v2901_v56 = vsub.f32 1.5, %v2900_v32 }
 0xd82   : > { %v2919_v58 = vadd.f32 %v3789_v55, %v2913_v63 }
 0xd83   : > { %v2902_v33 = vmul.f32 %v3863_v51, %v2901_v56 }
 0xd85   : > { %v2906_v59 = vsel %vm2905_vm15, %v3863_v51, %v2902_v33 }
 0xd86   : > { %v2908_v60 = vmul.f32 %v2906_v59, %v2874_v9  ;;  %2924 = sbr.rel (%p3659_p4) target bundleno = 3469 (0xd8d), region = 88 }
 0xd88   : > { %v2914_v62 = vmul.f32 %v3788_v6, %v2908_v60 }
 0xd8a   : > { %v2920_v61 = vadd.f32 %v3789_v55, %v2914_v62 }
 0xd8b   : > { %2925 = vst.msk [vmem:[#allocation2] sm:$0xff] %vm833_vm0, %v2919_v58 }
 0xd8c   : > { %2926 = vst.msk [vmem:[#allocation2 + $0x8] sm:$0xff] %vm833_vm0, %v2920_v61 }
 0xd8d PF: > { %p3660_p5 = scmp.ne.s32.totalorder %s3979_s24, 1 }
 0xd8f   : > { %2930 = sbr.rel (%p3660_p5) target bundleno = 3650 (0xe42), region = 92 }
 0xd94   : > { %v2931_v42 = vld [vmem:[#allocation2] sm:$0xff]  ;;  %v2932_v0 = vld [vmem:[#allocation2 + $0x8] sm:$0xff]  ;;  %v3884_v2 = vmov 8.0   ;;  %vm2970_vm2 = vcmask 517120   ;;  %v3867_v9 = vld [vmem:[#allocation3] ss:$0 sm:$0xff] }
 0xd95   : > { %v2933_v57 = vmul.f32 %v2931_v42, %v2919_v58  ;;  %v2934_v1 = vmul.f32 %v2932_v0, %v2920_v61  ;;  %3868 = vrcp.f32 %v3884_v2  ;;  %v3866_v46 = vld [vmem:[%s4622_s14] ss:$0 sm:$0xff]  ;;  %vm2998_vm6 = vcmask 1024  }
 0xd97   : > { %v2935_v3 = vsel %vm833_vm0, %v2933_v57, 0.0  ;;  %v2942_v25 = vsel %vm833_vm0, %v2934_v1, 0.0  ;;  %vm2967_vm0 = vcmask 1041409  }
 0xd98   : > { %v2936_v4 = vrot.slane %v2935_v3, 4  ;;  %v2943_v5 = vrot.slane %v2942_v25, 4 }
 0xd9a   : > { %v2937_v12 = vadd.f32 %v2936_v4, %v2935_v3  ;;  %v2944_v44 = vadd.f32 %v2943_v5, %v2942_v25 }
 0xd9b   : > { %v3869_v7 = vpop.eup %3868 }
 0xd9c   : > { %v2938_v8 = vrot.slane %v2937_v12, 2  ;;  %v2945_v10 = vrot.slane %v2944_v44, 2  ;;  %v2950_v20 = vmul.f32 8.0, %v3869_v7  ;;  %vm2954_vm1 = vweird.f32 %v3869_v7 }
 0xd9e   : > { %v2939_v48 = vadd.f32 %v2938_v8, %v2937_v12  ;;  %v2946_v17 = vadd.f32 %v2945_v10, %v2944_v44  ;;  %v2951_v18 = vsub.f32 1.0, %v2950_v20 }
 0xda0   : > { %v2940_v19 = vrot.slane %v2939_v48, 1  ;;  %v2947_v21 = vrot.slane %v2946_v17, 1  ;;  %v2952_v22 = vmul.f32 %v3869_v7, %v2951_v18 }
 0xda2   : > { %v2941_v26 = vadd.f32 %v2940_v19, %v2939_v48  ;;  %v2948_v29 = vadd.f32 %v2947_v21, %v2946_v17  ;;  %v2953_v41 = vadd.f32 %v3869_v7, %v2952_v22 }
 0xda4   : > { %v2955_v30 = vsel %vm2954_vm1, %v3869_v7, %v2953_v41 }
 0xda5   : > { %v2956_v24 = vmul.f32 %v2955_v30, %v2941_v26  ;;  %v2957_v16 = vmul.f32 %v2955_v30, %v2948_v29 }
 0xda7   : > { %v2962_v27 = vmul.f32 %v3866_v46, %v2956_v24  ;;  %v2963_v28 = vmul.f32 %v3866_v46, %v2957_v16 }
 0xda9   : > { %v2966_v34 = vrot.slane %v2963_v28, 7 }
 0xdab   : > { %v2968_v11 = vsel %vm2967_vm0, %v2966_v34, %v2962_v27 }
 0xdac   : > { %v2971_v40 = vsel %vm2970_vm2, %v2968_v11, 0.0 }
 0xdad   : > { %2972 = vadd.xlane.f32.xlu0 %v2971_v40 }
 0xe20   : > { %v2973_v36 = vpop.xlane.xlu0 %2972 }
 0xe21   : > { %v2978_v37 = vadd.f32 %v3867_v9, %v2973_v36 }
 0xe23   : > { %v2979_v38 = vsub.f32 0.0, %v2978_v37 }
 0xe25   : > { %v2980_v39 = vmul.f32 1.442695, %v2979_v38 }
 0xe27   : > { %3870 = vpow2.f32 %v2980_v39 }
 0xe2d   : > { %v3871_v23 = vpop.eup %3870 }
 0xe2e   : > { %v2982_v35 = vadd.f32 1.0, %v3871_v23 }
 0xe30   : > { %3872 = vrcp.f32 %v2982_v35  ;;  %v2994_v45 = vand.u32 2147483648, %v2982_v35  ;;  %v2992_v50 = vand.u32 2147483647, %v2982_v35  ;;  %vm2988_vm4 = vweird.f32 %v2982_v35 }
 0xe32   : > { %v2995_v51 = vor.u32 1.1754944e-38, %v2994_v45  ;;  %vm2993_vm7 = vcmp.eq.f32.partialorder %v2992_v50, 8.507059e+37 }
 0xe36   : > { %v3873_v15 = vpop.eup %3872 }
 0xe37   : > { %v2984_v43 = vmul.f32 %v3873_v15, %v2982_v35  ;;  %vm2989_vm3 = vweird.f32 %v3873_v15 }
 0xe38   : > { %vm2990_vm5 = vmor %vm2988_vm4, %vm2989_vm3 }
 0xe39   : > { %v2985_v31 = vsub.f32 1.0, %v2984_v43 }
 0xe3b   : > { %v2986_v47 = vmul.f32 %v3873_v15, %v2985_v31 }
 0xe3d   : > { %v2987_v14 = vadd.f32 %v3873_v15, %v2986_v47 }
 0xe3f   : > { %v2991_v53 = vsel %vm2990_vm5, %v3873_v15, %v2987_v14 }
 0xe40   : > { %v2996_v49 = vsel %vm2993_vm7, %v2995_v51, %v2991_v53 }
 0xe41   : > { %2999 = vst.msk [vmem:[%s4624_s16] sm:$0x3] %vm2998_vm6, %v2996_v49 }
 0xe42 PF: > { %s28_s23 = sadd.s32 1, %s3880_s23  }
 0xe43   : > { %p25_p6 = scmp.ge.s32.totalorder %s28_s23, 4  }
 0xe45   :  { %27 = sbr.rel (!%p25_p6) target bundleno = 3 (0x3), region = 157 }

</bundles_post_ra>
